<compile_context>
chip_gen: v5e
topology: v5e:2x2
jax: 0.10.0
libtpu: 0.0.40
codegen_flags: <defaults>
</compile_context>

<pallas_src>
import functools

import jax
import jax.numpy as jnp
from jax.experimental import pallas as pl
from jax.experimental.pallas import tpu as pltpu


_LN_EPS = 1e-6        # module uses norm_layer=partial(nn.LayerNorm, eps=1e-6)
_NEG_BIG = -1e30      # softmax mask value for padded keys


def _layernorm(x, gamma, beta, eps=_LN_EPS):
    mu = jnp.mean(x, axis=-1, keepdims=True)
    var = jnp.mean((x - mu) * (x - mu), axis=-1, keepdims=True)
    return (x - mu) * jax.lax.rsqrt(var + eps) * gamma + beta


def _gelu_tanh(x):
    # tanh-form GELU: one EUP transcendental + a few VPU muls.
    # TODO(synk): torch nn.GELU() default is the exact erf form; the tanh form
    # deviates by <~1e-3, below the bf16-matmul noise floor of this kernel.
    c = 0.7978845608028654  # sqrt(2/pi)
    return 0.5 * x * (1.0 + jnp.tanh(c * (x + 0.044715 * x * x * x)))


def _block_kernel(
    xq_ref,       # (1, TQ, C)  query rows of this tile
    xkv_ref,      # (1, NP, C)  full (padded) sequence of this batch element
    ln1_g_ref, ln1_b_ref,        # (1, C)
    wq_ref, wk_ref, wv_ref,      # (C, C)   bf16
    wp_ref,                      # (C, C)   bf16
    bp_ref,                      # (1, C)
    ln2_g_ref, ln2_b_ref,        # (1, C)
    w1_ref,                      # (C, HID) bf16
    b1_ref,                      # (1, HID)
    w2_ref,                      # (HID, C) bf16
    b2_ref,                      # (1, C)
    o_ref,                       # (1, TQ, C)
    k_scr,                       # (NP, C) bf16 scratch (persists across qi)
    v_scr,                       # (NP, C) bf16 scratch
    *,
    num_heads,
    scale,
    n_true,
):
    f32 = jnp.float32
    bf16 = jnp.bfloat16

    # ---- K/V cache: LN1 + K/V projection over the full sequence, computed
    # once per batch element (first query tile only), reused by all tiles.
    @pl.when(pl.program_id(1) == 0)
    def _():
        xkv_n = _layernorm(xkv_ref[0].astype(f32), ln1_g_ref[...], ln1_b_ref[...])
        xkv_b = xkv_n.astype(bf16)
        k_scr[...] = jnp.dot(xkv_b, wk_ref[...],
                             preferred_element_type=f32).astype(bf16)
        v_scr[...] = jnp.dot(xkv_b, wv_ref[...],
                             preferred_element_type=f32).astype(bf16)

    xq = xq_ref[0].astype(f32)                        # (TQ, C)
    tq, c = xq.shape
    head_dim = c // num_heads

    # ---- LN1 on the query tile + Q projection; fold softmax scale into q.
    xq_n = _layernorm(xq, ln1_g_ref[...], ln1_b_ref[...])
    q = jnp.dot(xq_n.astype(bf16), wq_ref[...], preferred_element_type=f32) * scale

    k = k_scr[...]                                    # (NP, C) bf16
    v = v_scr[...]
    n_pad = k.shape[0]

    if n_pad > n_true:                                # static (trace-time) branch
        key_mask = jax.lax.broadcasted_iota(jnp.int32, (1, n_pad), 1) < n_true

    # ---- multi-head attention; accumulate each head straight into the
    # output projection (no concatenate / lane re-packing of head outputs).
    attn = jnp.zeros((tq, c), f32)
    for h in range(num_heads):
        lo, hi = h * head_dim, (h + 1) * head_dim
        qh = q[:, lo:hi].astype(bf16)                 # (TQ, D)
        kh = k[:, lo:hi]                              # (NP, D)
        vh = v[:, lo:hi]                              # (NP, D)
        # scores = qh @ kh^T : contract last dims of both (no transpose).
        s = jax.lax.dot_general(qh, kh, (((1,), (1,)), ((), ())),
                                preferred_element_type=f32)          # (TQ, NP)
        if n_pad > n_true:
            s = jnp.where(key_mask, s, _NEG_BIG)
        s = s - jnp.max(s, axis=-1, keepdims=True)
        p = jnp.exp(s)
        p = p * pl.reciprocal(jnp.sum(p, axis=-1, keepdims=True), approx=True)
        oh = jnp.dot(p.astype(bf16), vh, preferred_element_type=f32)  # (TQ, D)
        attn = attn + jnp.dot(oh.astype(bf16), wp_ref[lo:hi, :],
                              preferred_element_type=f32)             # (TQ, C)

    x1 = xq + attn + bp_ref[...]          # attn_drop/proj_drop = 0 -> identity

    # ---- MLP branch: LN2 -> fc1 -> GELU -> fc2, then residual.
    x1_n = _layernorm(x1, ln2_g_ref[...], ln2_b_ref[...])
    hmid = jnp.dot(x1_n.astype(bf16), w1_ref[...],
                   preferred_element_type=f32) + b1_ref[...]
    hmid = _gelu_tanh(hmid)
    y = jnp.dot(hmid.astype(bf16), w2_ref[...],
                preferred_element_type=f32) + b2_ref[...]

    o_ref[0] = (x1 + y).astype(o_ref.dtype)


def _vmem_capacity_bytes():
    try:
        return int(pltpu.get_tpu_info().vmem_capacity_bytes)
    except Exception:
        return 64 * 1024 * 1024   # conservative (v7x-sized) fallback


def transformer_block(x, params, *, num_heads, qk_scale=None):
    """x: (B, N, C) float32, channels-last.  Returns (B, N, C)."""
    B, N, C = x.shape
    assert C % num_heads == 0
    (ln1_g, ln1_b, wq, wk, wv, wp, bp, ln2_g, ln2_b, w1, b1, w2, b2) = params
    HID = w1.shape[1]
    head_dim = C // num_heads
    scale = float(qk_scale) if qk_scale is not None else head_dim ** (-0.5)

    # Generation-aware VMEM budget & query-tile size.
    vmem_cap = _vmem_capacity_bytes()
    vmem_limit = int(vmem_cap * 0.8)          # ~51 MiB on v7x, ~102 MiB on v5e/v6e
    tq_base = 256 if vmem_cap >= 96 * 1024 * 1024 else 128

    if N <= tq_base:
        tq, n_pad = N, N                      # small sequence: single tile, no pad
    else:
        tq = tq_base
        n_pad = pl.cdiv(N, tq) * tq           # pad; padded keys masked in softmax

    x_in = x if n_pad == N else jnp.pad(x, ((0, 0), (0, n_pad - N), (0, 0)))
    n_q_tiles = n_pad // tq

    def _param(shape):
        # Grid-invariant parameter block: single-buffered (double-buffering a
        # constant-index block only wastes VMEM).
        return pl.BlockSpec(shape, lambda b, qi: (0,) * len(shape),
                            pipeline_mode=pl.Buffered(1))

    kernel = functools.partial(_block_kernel, num_heads=num_heads,
                               scale=scale, n_true=N)

    out = pl.pallas_call(
        kernel,
        out_shape=jax.ShapeDtypeStruct((B, n_pad, C), x.dtype),
        grid_spec=pltpu.PrefetchScalarGridSpec(
            num_scalar_prefetch=0,
            grid=(B, n_q_tiles),
            in_specs=[
                pl.BlockSpec((1, tq, C), lambda b, qi: (b, qi, 0)),    # query tile
                pl.BlockSpec((1, n_pad, C), lambda b, qi: (b, 0, 0)),  # full seq (K/V src)
                _param((1, C)), _param((1, C)),                        # ln1 gamma/beta
                _param((C, C)), _param((C, C)), _param((C, C)),        # wq, wk, wv
                _param((C, C)), _param((1, C)),                        # wp, bp
                _param((1, C)), _param((1, C)),                        # ln2 gamma/beta
                _param((C, HID)), _param((1, HID)),                    # w1, b1
                _param((HID, C)), _param((1, C)),                      # w2, b2
            ],
            out_specs=pl.BlockSpec((1, tq, C), lambda b, qi: (b, qi, 0)),
            scratch_shapes=[
                pltpu.VMEM((n_pad, C), jnp.bfloat16),   # K cache
                pltpu.VMEM((n_pad, C), jnp.bfloat16),   # V cache
            ],
        ),
        compiler_params=pltpu.CompilerParams(
            # K/V scratch is carried across the qi axis -> "arbitrary".
            dimension_semantics=("parallel", "arbitrary"),
            vmem_limit_bytes=vmem_limit,
        ),
    )(x_in, x_in, ln1_g, ln1_b, wq, wk, wv, wp, bp, ln2_g, ln2_b, w1, b1, w2, b2)

    return out if n_pad == N else out[:, :N, :]


def init_params(key, dim, num_heads, mlp_ratio=1.0):
    """Deterministic synthetic parameters matching the PyTorch Block shapes.

    torch nn.Linear stores weight as (out, in); the kernel uses the transposed
    (in, out) matrices.  Matmul weights are stored in bf16 (MXU operands);
    LayerNorm params and biases stay f32.
    """
    hid = int(dim * mlp_ratio)
    keys = jax.random.split(key, 8)
    s = 0.1

    ln1_g = jnp.ones((1, dim), jnp.float32)
    ln1_b = jnp.zeros((1, dim), jnp.float32)

    wq = (s * jax.random.normal(keys[0], (dim, dim), jnp.float32)).astype(jnp.bfloat16)
    wk = (s * jax.random.normal(keys[1], (dim, dim), jnp.float32)).astype(jnp.bfloat16)
    wv = (s * jax.random.normal(keys[2], (dim, dim), jnp.float32)).astype(jnp.bfloat16)
    wp = (s * jax.random.normal(keys[3], (dim, dim), jnp.float32)).astype(jnp.bfloat16)
    bp = s * jax.random.normal(keys[4], (1, dim), jnp.float32)

    ln2_g = jnp.ones((1, dim), jnp.float32)
    ln2_b = jnp.zeros((1, dim), jnp.float32)

    w1 = (s * jax.random.normal(keys[5], (dim, hid), jnp.float32)).astype(jnp.bfloat16)
    b1 = s * jax.random.normal(keys[6], (1, hid), jnp.float32)
    w2 = (s * jax.random.normal(keys[7], (hid, dim), jnp.float32)).astype(jnp.bfloat16)
    b2 = jnp.zeros((1, dim), jnp.float32)

    return (ln1_g, ln1_b, wq, wk, wv, wp, bp, ln2_g, ln2_b, w1, b1, w2, b2)


def reference_block(x, params, *, num_heads, qk_scale=None):
    """Pure-JAX f32 reference (exact-erf GELU, exact softmax) for sanity check."""
    (ln1_g, ln1_b, wq, wk, wv, wp, bp, ln2_g, ln2_b, w1, b1, w2, b2) = params
    B, N, C = x.shape
    D = C // num_heads
    scale = float(qk_scale) if qk_scale is not None else D ** (-0.5)
    f32 = jnp.float32

    def ln(v, g, b):
        mu = jnp.mean(v, -1, keepdims=True)
        var = jnp.mean((v - mu) ** 2, -1, keepdims=True)
        return (v - mu) / jnp.sqrt(var + _LN_EPS) * g + b

    xn = ln(x, ln1_g, ln1_b)
    q = xn @ wq.astype(f32)
    k = xn @ wk.astype(f32)
    v = xn @ wv.astype(f32)
    q = q.reshape(B, N, num_heads, D).transpose(0, 2, 1, 3)
    k = k.reshape(B, N, num_heads, D).transpose(0, 2, 1, 3)
    v = v.reshape(B, N, num_heads, D).transpose(0, 2, 1, 3)
    att = jax.nn.softmax(jnp.einsum("bhqd,bhkd->bhqk", q, k) * scale, axis=-1)
    o = jnp.einsum("bhqk,bhkd->bhqd", att, v).transpose(0, 2, 1, 3).reshape(B, N, C)
    o = o @ wp.astype(f32) + bp
    x1 = x + o
    xn2 = ln(x1, ln2_g, ln2_b)
    h = jax.nn.gelu(xn2 @ w1.astype(f32) + b1, approximate=False)
    y = h @ w2.astype(f32) + b2
    return x1 + y


if __name__ == "__main__":
    # Small shapes consistent with the module: batch=2, seq=16, dim=32,
    # num_heads=4 (head_dim=8), mlp_ratio=1.0 (hidden=32).
    B, N, C = 2, 16, 32
    NUM_HEADS = 4
    MLP_RATIO = 1.0

    key = jax.random.PRNGKey(0)
    kx, kp = jax.random.split(key)
    x = jax.random.normal(kx, (B, N, C), jnp.float32)
    params = init_params(kp, C, NUM_HEADS, MLP_RATIO)

    out = transformer_block(x, params, num_heads=NUM_HEADS)
    jax.block_until_ready(out)
    assert out.shape == (B, N, C) and out.dtype == jnp.float32

    ref = reference_block(x, params, num_heads=NUM_HEADS)
    max_err = float(jnp.max(jnp.abs(out - ref)))
    # bf16 MXU operands + tanh-GELU + approx-reciprocal softmax -> loose tol.
    assert max_err < 1e-1, f"kernel/reference mismatch: max|diff|={max_err}"

    print("KERNEL_OK")
</pallas_src>

<mosaic_0001>
module attributes {stable_mosaic.version = 11 : i64} {
  func.func @_block_kernel(%arg0: i32, %arg1: i32, %arg2: memref<1x16x32xf32, #tpu.memory_space<vmem>>, %arg3: memref<1x16x32xf32, #tpu.memory_space<vmem>>, %arg4: memref<1x32xf32, #tpu.memory_space<vmem>>, %arg5: memref<1x32xf32, #tpu.memory_space<vmem>>, %arg6: memref<32x32xbf16, #tpu.memory_space<vmem>>, %arg7: memref<32x32xbf16, #tpu.memory_space<vmem>>, %arg8: memref<32x32xbf16, #tpu.memory_space<vmem>>, %arg9: memref<32x32xbf16, #tpu.memory_space<vmem>>, %arg10: memref<1x32xf32, #tpu.memory_space<vmem>>, %arg11: memref<1x32xf32, #tpu.memory_space<vmem>>, %arg12: memref<1x32xf32, #tpu.memory_space<vmem>>, %arg13: memref<32x32xbf16, #tpu.memory_space<vmem>>, %arg14: memref<1x32xf32, #tpu.memory_space<vmem>>, %arg15: memref<32x32xbf16, #tpu.memory_space<vmem>>, %arg16: memref<1x32xf32, #tpu.memory_space<vmem>>, %arg17: memref<1x16x32xf32, #tpu.memory_space<vmem>>, %arg18: memref<16x32xbf16, #tpu.memory_space<vmem>>, %arg19: memref<16x32xbf16, #tpu.memory_space<vmem>>) attributes {dimension_semantics = [#tpu.dimension_semantics<parallel>, #tpu.dimension_semantics<arbitrary>], iteration_bounds = array<i64: 2, 1>, scalar_prefetch = 0 : i64, scratch_operands = 2 : i64, tpu.core_type = #tpu.core_type<tc>, window_params = [{transform_indices = @transform_0, window_bounds = array<i64: 1, 16, 32>}, {transform_indices = @transform_1, window_bounds = array<i64: 1, 16, 32>}, {pipeline_mode = #tpu.pipeline_mode<synchronous>, transform_indices = @transform_2, window_bounds = array<i64: 1, 32>}, {pipeline_mode = #tpu.pipeline_mode<synchronous>, transform_indices = @transform_3, window_bounds = array<i64: 1, 32>}, {pipeline_mode = #tpu.pipeline_mode<synchronous>, transform_indices = @transform_4, window_bounds = array<i64: 32, 32>}, {pipeline_mode = #tpu.pipeline_mode<synchronous>, transform_indices = @transform_5, window_bounds = array<i64: 32, 32>}, {pipeline_mode = #tpu.pipeline_mode<synchronous>, transform_indices = @transform_6, window_bounds = array<i64: 32, 32>}, {pipeline_mode = #tpu.pipeline_mode<synchronous>, transform_indices = @transform_7, window_bounds = array<i64: 32, 32>}, {pipeline_mode = #tpu.pipeline_mode<synchronous>, transform_indices = @transform_8, window_bounds = array<i64: 1, 32>}, {pipeline_mode = #tpu.pipeline_mode<synchronous>, transform_indices = @transform_9, window_bounds = array<i64: 1, 32>}, {pipeline_mode = #tpu.pipeline_mode<synchronous>, transform_indices = @transform_10, window_bounds = array<i64: 1, 32>}, {pipeline_mode = #tpu.pipeline_mode<synchronous>, transform_indices = @transform_11, window_bounds = array<i64: 32, 32>}, {pipeline_mode = #tpu.pipeline_mode<synchronous>, transform_indices = @transform_12, window_bounds = array<i64: 1, 32>}, {pipeline_mode = #tpu.pipeline_mode<synchronous>, transform_indices = @transform_13, window_bounds = array<i64: 32, 32>}, {pipeline_mode = #tpu.pipeline_mode<synchronous>, transform_indices = @transform_14, window_bounds = array<i64: 1, 32>}, {transform_indices = @transform_15, window_bounds = array<i64: 1, 16, 32>}]} {
    %c0_i32 = arith.constant 0 : i32
    %0 = arith.cmpi eq, %arg1, %c0_i32 : i32
    %1 = arith.extui %0 : i1 to i32
    %c0_i32_0 = arith.constant 0 : i32
    %2 = arith.cmpi ne, %1, %c0_i32_0 : i32
    scf.if %2 {
      %c0_73 = arith.constant 0 : index
      %c0_74 = arith.constant 0 : index
      %c0_75 = arith.constant 0 : index
      %182 = vector.load %arg3[%c0_73, %c0_74, %c0_75] : memref<1x16x32xf32, #tpu.memory_space<vmem>>, vector<1x16x32xf32>
      %183 = vector.shape_cast %182 : vector<1x16x32xf32> to vector<16x32xf32>
      %c0_76 = arith.constant 0 : index
      %c0_77 = arith.constant 0 : index
      %184 = vector.load %arg4[%c0_76, %c0_77] : memref<1x32xf32, #tpu.memory_space<vmem>>, vector<1x32xf32>
      %c0_78 = arith.constant 0 : index
      %c0_79 = arith.constant 0 : index
      %185 = vector.load %arg5[%c0_78, %c0_79] : memref<1x32xf32, #tpu.memory_space<vmem>>, vector<1x32xf32>
      %cst_80 = arith.constant dense<0.000000e+00> : vector<16xf32>
      %186 = vector.multi_reduction <add>, %183, %cst_80 [1] : vector<16x32xf32> to vector<16xf32>
      %187 = vector.shape_cast %186 : vector<16xf32> to vector<16x1xf32>
      %cst_81 = arith.constant 3.200000e+01 : f32
      %188 = vector.broadcast %cst_81 : f32 to vector<16x1xf32>
      %189 = arith.divf %187, %188 : vector<16x1xf32>
      %190 = vector.broadcast %189 : vector<16x1xf32> to vector<16x32xf32>
      %191 = arith.subf %183, %190 : vector<16x32xf32>
      %192 = vector.broadcast %189 : vector<16x1xf32> to vector<16x32xf32>
      %193 = arith.subf %183, %192 : vector<16x32xf32>
      %194 = arith.mulf %191, %193 : vector<16x32xf32>
      %cst_82 = arith.constant dense<0.000000e+00> : vector<16xf32>
      %195 = vector.multi_reduction <add>, %194, %cst_82 [1] : vector<16x32xf32> to vector<16xf32>
      %196 = vector.shape_cast %195 : vector<16xf32> to vector<16x1xf32>
      %cst_83 = arith.constant 3.200000e+01 : f32
      %197 = vector.broadcast %cst_83 : f32 to vector<16x1xf32>
      %198 = arith.divf %196, %197 : vector<16x1xf32>
      %199 = vector.broadcast %189 : vector<16x1xf32> to vector<16x32xf32>
      %200 = arith.subf %183, %199 : vector<16x32xf32>
      %cst_84 = arith.constant 9.99999997E-7 : f32
      %201 = vector.broadcast %cst_84 : f32 to vector<16x1xf32>
      %202 = arith.addf %198, %201 : vector<16x1xf32>
      %203 = math.rsqrt %202 : vector<16x1xf32>
      %204 = vector.broadcast %203 : vector<16x1xf32> to vector<16x32xf32>
      %205 = arith.mulf %200, %204 : vector<16x32xf32>
      %206 = vector.broadcast %184 : vector<1x32xf32> to vector<16x32xf32>
      %207 = arith.mulf %205, %206 : vector<16x32xf32>
      %208 = vector.broadcast %185 : vector<1x32xf32> to vector<16x32xf32>
      %209 = arith.addf %207, %208 : vector<16x32xf32>
      %210 = arith.truncf %209 : vector<16x32xf32> to vector<16x32xbf16>
      %c0_85 = arith.constant 0 : index
      %c0_86 = arith.constant 0 : index
      %211 = vector.load %arg7[%c0_85, %c0_86] : memref<32x32xbf16, #tpu.memory_space<vmem>>, vector<32x32xbf16>
      %cst_87 = arith.constant dense<0.000000e+00> : vector<16x32xf32>
      %212 = tpu.matmul %210, %211, %cst_87 {dimension_numbers = #tpu.dot_dimension_numbers<[1], [0], [0], [1], [0, 0, 1, 1], [], []>} : vector<16x32xbf16>, vector<32x32xbf16>, vector<16x32xf32> -> vector<16x32xf32>
      %213 = arith.truncf %212 : vector<16x32xf32> to vector<16x32xbf16>
      %c0_88 = arith.constant 0 : index
      %c0_89 = arith.constant 0 : index
      %214 = vector.load %arg18[%c0_88, %c0_89] : memref<16x32xbf16, #tpu.memory_space<vmem>>, vector<16x32xbf16>
      tpu.vector_store %arg18[%c0_88, %c0_89], %213 {strides = array<i32>} : memref<16x32xbf16, #tpu.memory_space<vmem>>, vector<16x32xbf16>,
      %c0_90 = arith.constant 0 : index
      %c0_91 = arith.constant 0 : index
      %215 = vector.load %arg8[%c0_90, %c0_91] : memref<32x32xbf16, #tpu.memory_space<vmem>>, vector<32x32xbf16>
      %cst_92 = arith.constant dense<0.000000e+00> : vector<16x32xf32>
      %216 = tpu.matmul %210, %215, %cst_92 {dimension_numbers = #tpu.dot_dimension_numbers<[1], [0], [0], [1], [0, 0, 1, 1], [], []>} : vector<16x32xbf16>, vector<32x32xbf16>, vector<16x32xf32> -> vector<16x32xf32>
      %217 = arith.truncf %216 : vector<16x32xf32> to vector<16x32xbf16>
      %c0_93 = arith.constant 0 : index
      %c0_94 = arith.constant 0 : index
      %218 = vector.load %arg19[%c0_93, %c0_94] : memref<16x32xbf16, #tpu.memory_space<vmem>>, vector<16x32xbf16>
      tpu.vector_store %arg19[%c0_93, %c0_94], %217 {strides = array<i32>} : memref<16x32xbf16, #tpu.memory_space<vmem>>, vector<16x32xbf16>,
    } else {
    }
    %c0 = arith.constant 0 : index
    %c0_1 = arith.constant 0 : index
    %c0_2 = arith.constant 0 : index
    %3 = vector.load %arg2[%c0, %c0_1, %c0_2] : memref<1x16x32xf32, #tpu.memory_space<vmem>>, vector<1x16x32xf32>
    %4 = vector.shape_cast %3 : vector<1x16x32xf32> to vector<16x32xf32>
    %c0_3 = arith.constant 0 : index
    %c0_4 = arith.constant 0 : index
    %5 = vector.load %arg4[%c0_3, %c0_4] : memref<1x32xf32, #tpu.memory_space<vmem>>, vector<1x32xf32>
    %c0_5 = arith.constant 0 : index
    %c0_6 = arith.constant 0 : index
    %6 = vector.load %arg5[%c0_5, %c0_6] : memref<1x32xf32, #tpu.memory_space<vmem>>, vector<1x32xf32>
    %cst = arith.constant dense<0.000000e+00> : vector<16xf32>
    %7 = vector.multi_reduction <add>, %4, %cst [1] : vector<16x32xf32> to vector<16xf32>
    %8 = vector.shape_cast %7 : vector<16xf32> to vector<16x1xf32>
    %cst_7 = arith.constant 3.200000e+01 : f32
    %9 = vector.broadcast %cst_7 : f32 to vector<16x1xf32>
    %10 = arith.divf %8, %9 : vector<16x1xf32>
    %11 = vector.broadcast %10 : vector<16x1xf32> to vector<16x32xf32>
    %12 = arith.subf %4, %11 : vector<16x32xf32>
    %13 = vector.broadcast %10 : vector<16x1xf32> to vector<16x32xf32>
    %14 = arith.subf %4, %13 : vector<16x32xf32>
    %15 = arith.mulf %12, %14 : vector<16x32xf32>
    %cst_8 = arith.constant dense<0.000000e+00> : vector<16xf32>
    %16 = vector.multi_reduction <add>, %15, %cst_8 [1] : vector<16x32xf32> to vector<16xf32>
    %17 = vector.shape_cast %16 : vector<16xf32> to vector<16x1xf32>
    %cst_9 = arith.constant 3.200000e+01 : f32
    %18 = vector.broadcast %cst_9 : f32 to vector<16x1xf32>
    %19 = arith.divf %17, %18 : vector<16x1xf32>
    %20 = vector.broadcast %10 : vector<16x1xf32> to vector<16x32xf32>
    %21 = arith.subf %4, %20 : vector<16x32xf32>
    %cst_10 = arith.constant 9.99999997E-7 : f32
    %22 = vector.broadcast %cst_10 : f32 to vector<16x1xf32>
    %23 = arith.addf %19, %22 : vector<16x1xf32>
    %24 = math.rsqrt %23 : vector<16x1xf32>
    %25 = vector.broadcast %24 : vector<16x1xf32> to vector<16x32xf32>
    %26 = arith.mulf %21, %25 : vector<16x32xf32>
    %27 = vector.broadcast %5 : vector<1x32xf32> to vector<16x32xf32>
    %28 = arith.mulf %26, %27 : vector<16x32xf32>
    %29 = vector.broadcast %6 : vector<1x32xf32> to vector<16x32xf32>
    %30 = arith.addf %28, %29 : vector<16x32xf32>
    %31 = arith.truncf %30 : vector<16x32xf32> to vector<16x32xbf16>
    %c0_11 = arith.constant 0 : index
    %c0_12 = arith.constant 0 : index
    %32 = vector.load %arg6[%c0_11, %c0_12] : memref<32x32xbf16, #tpu.memory_space<vmem>>, vector<32x32xbf16>
    %cst_13 = arith.constant dense<0.000000e+00> : vector<16x32xf32>
    %33 = tpu.matmul %31, %32, %cst_13 {dimension_numbers = #tpu.dot_dimension_numbers<[1], [0], [0], [1], [0, 0, 1, 1], [], []>} : vector<16x32xbf16>, vector<32x32xbf16>, vector<16x32xf32> -> vector<16x32xf32>
    %cst_14 = arith.constant 0.353553385 : f32
    %34 = vector.broadcast %cst_14 : f32 to vector<16x32xf32>
    %35 = arith.mulf %33, %34 : vector<16x32xf32>
    %c0_15 = arith.constant 0 : index
    %c0_16 = arith.constant 0 : index
    %36 = vector.load %arg18[%c0_15, %c0_16] : memref<16x32xbf16, #tpu.memory_space<vmem>>, vector<16x32xbf16>
    %c0_17 = arith.constant 0 : index
    %c0_18 = arith.constant 0 : index
    %37 = vector.load %arg19[%c0_17, %c0_18] : memref<16x32xbf16, #tpu.memory_space<vmem>>, vector<16x32xbf16>
    %cst_19 = arith.constant 0.000000e+00 : f32
    %38 = vector.broadcast %cst_19 : f32 to vector<16x32xf32>
    %39 = vector.extract_strided_slice %35 {offsets = [0, 0], sizes = [16, 8], strides = [1, 1]} : vector<16x32xf32> to vector<16x8xf32>
    %40 = arith.truncf %39 : vector<16x8xf32> to vector<16x8xbf16>
    %41 = vector.extract_strided_slice %36 {offsets = [0, 0], sizes = [16, 8], strides = [1, 1]} : vector<16x32xbf16> to vector<16x8xbf16>
    %42 = vector.extract_strided_slice %37 {offsets = [0, 0], sizes = [16, 8], strides = [1, 1]} : vector<16x32xbf16> to vector<16x8xbf16>
    %cst_20 = arith.constant dense<0.000000e+00> : vector<16x16xf32>
    %43 = tpu.matmul %40, %41, %cst_20 {dimension_numbers = #tpu.dot_dimension_numbers<[1], [1], [0], [0], [0, 0, 1, 0], [], []>} : vector<16x8xbf16>, vector<16x8xbf16>, vector<16x16xf32> -> vector<16x16xf32>
    %cst_21 = arith.constant dense<0xFF800000> : vector<16xf32>
    %44 = vector.multi_reduction <maximumf>, %43, %cst_21 [1] : vector<16x16xf32> to vector<16xf32>
    %45 = vector.shape_cast %44 : vector<16xf32> to vector<16x1xf32>
    %46 = vector.broadcast %45 : vector<16x1xf32> to vector<16x16xf32>
    %47 = arith.subf %43, %46 : vector<16x16xf32>
    %48 = math.exp %47 : vector<16x16xf32>
    %cst_22 = arith.constant dense<0.000000e+00> : vector<16xf32>
    %49 = vector.multi_reduction <add>, %48, %cst_22 [1] : vector<16x16xf32> to vector<16xf32>
    %50 = vector.shape_cast %49 : vector<16xf32> to vector<16x1xf32>
    %51 = tpu.reciprocal %50 {approx = true} : vector<16x1xf32> -> vector<16x1xf32>
    %52 = vector.broadcast %51 : vector<16x1xf32> to vector<16x16xf32>
    %53 = arith.mulf %48, %52 : vector<16x16xf32>
    %54 = arith.truncf %53 : vector<16x16xf32> to vector<16x16xbf16>
    %cst_23 = arith.constant dense<0.000000e+00> : vector<16x8xf32>
    %55 = tpu.matmul %54, %42, %cst_23 {dimension_numbers = #tpu.dot_dimension_numbers<[1], [0], [0], [1], [0, 0, 1, 1], [], []>} : vector<16x16xbf16>, vector<16x8xbf16>, vector<16x8xf32> -> vector<16x8xf32>
    %56 = arith.truncf %55 : vector<16x8xf32> to vector<16x8xbf16>
    %c0_24 = arith.constant 0 : index
    %c0_25 = arith.constant 0 : index
    %57 = vector.load %arg9[%c0_24, %c0_25] : memref<32x32xbf16, #tpu.memory_space<vmem>>, vector<8x32xbf16>
    %cst_26 = arith.constant dense<0.000000e+00> : vector<16x32xf32>
    %58 = tpu.matmul %56, %57, %cst_26 {dimension_numbers = #tpu.dot_dimension_numbers<[1], [0], [0], [1], [0, 0, 1, 1], [], []>} : vector<16x8xbf16>, vector<8x32xbf16>, vector<16x32xf32> -> vector<16x32xf32>
    %59 = arith.addf %38, %58 : vector<16x32xf32>
    %60 = vector.extract_strided_slice %35 {offsets = [0, 8], sizes = [16, 8], strides = [1, 1]} : vector<16x32xf32> to vector<16x8xf32>
    %61 = arith.truncf %60 : vector<16x8xf32> to vector<16x8xbf16>
    %62 = vector.extract_strided_slice %36 {offsets = [0, 8], sizes = [16, 8], strides = [1, 1]} : vector<16x32xbf16> to vector<16x8xbf16>
    %63 = vector.extract_strided_slice %37 {offsets = [0, 8], sizes = [16, 8], strides = [1, 1]} : vector<16x32xbf16> to vector<16x8xbf16>
    %cst_27 = arith.constant dense<0.000000e+00> : vector<16x16xf32>
    %64 = tpu.matmul %61, %62, %cst_27 {dimension_numbers = #tpu.dot_dimension_numbers<[1], [1], [0], [0], [0, 0, 1, 0], [], []>} : vector<16x8xbf16>, vector<16x8xbf16>, vector<16x16xf32> -> vector<16x16xf32>
    %cst_28 = arith.constant dense<0xFF800000> : vector<16xf32>
    %65 = vector.multi_reduction <maximumf>, %64, %cst_28 [1] : vector<16x16xf32> to vector<16xf32>
    %66 = vector.shape_cast %65 : vector<16xf32> to vector<16x1xf32>
    %67 = vector.broadcast %66 : vector<16x1xf32> to vector<16x16xf32>
    %68 = arith.subf %64, %67 : vector<16x16xf32>
    %69 = math.exp %68 : vector<16x16xf32>
    %cst_29 = arith.constant dense<0.000000e+00> : vector<16xf32>
    %70 = vector.multi_reduction <add>, %69, %cst_29 [1] : vector<16x16xf32> to vector<16xf32>
    %71 = vector.shape_cast %70 : vector<16xf32> to vector<16x1xf32>
    %72 = tpu.reciprocal %71 {approx = true} : vector<16x1xf32> -> vector<16x1xf32>
    %73 = vector.broadcast %72 : vector<16x1xf32> to vector<16x16xf32>
    %74 = arith.mulf %69, %73 : vector<16x16xf32>
    %75 = arith.truncf %74 : vector<16x16xf32> to vector<16x16xbf16>
    %cst_30 = arith.constant dense<0.000000e+00> : vector<16x8xf32>
    %76 = tpu.matmul %75, %63, %cst_30 {dimension_numbers = #tpu.dot_dimension_numbers<[1], [0], [0], [1], [0, 0, 1, 1], [], []>} : vector<16x16xbf16>, vector<16x8xbf16>, vector<16x8xf32> -> vector<16x8xf32>
    %77 = arith.truncf %76 : vector<16x8xf32> to vector<16x8xbf16>
    %c8 = arith.constant 8 : index
    %c0_31 = arith.constant 0 : index
    %78 = vector.load %arg9[%c8, %c0_31] : memref<32x32xbf16, #tpu.memory_space<vmem>>, vector<8x32xbf16>
    %cst_32 = arith.constant dense<0.000000e+00> : vector<16x32xf32>
    %79 = tpu.matmul %77, %78, %cst_32 {dimension_numbers = #tpu.dot_dimension_numbers<[1], [0], [0], [1], [0, 0, 1, 1], [], []>} : vector<16x8xbf16>, vector<8x32xbf16>, vector<16x32xf32> -> vector<16x32xf32>
    %80 = arith.addf %59, %79 : vector<16x32xf32>
    %81 = vector.extract_strided_slice %35 {offsets = [0, 16], sizes = [16, 8], strides = [1, 1]} : vector<16x32xf32> to vector<16x8xf32>
    %82 = arith.truncf %81 : vector<16x8xf32> to vector<16x8xbf16>
    %83 = vector.extract_strided_slice %36 {offsets = [0, 16], sizes = [16, 8], strides = [1, 1]} : vector<16x32xbf16> to vector<16x8xbf16>
    %84 = vector.extract_strided_slice %37 {offsets = [0, 16], sizes = [16, 8], strides = [1, 1]} : vector<16x32xbf16> to vector<16x8xbf16>
    %cst_33 = arith.constant dense<0.000000e+00> : vector<16x16xf32>
    %85 = tpu.matmul %82, %83, %cst_33 {dimension_numbers = #tpu.dot_dimension_numbers<[1], [1], [0], [0], [0, 0, 1, 0], [], []>} : vector<16x8xbf16>, vector<16x8xbf16>, vector<16x16xf32> -> vector<16x16xf32>
    %cst_34 = arith.constant dense<0xFF800000> : vector<16xf32>
    %86 = vector.multi_reduction <maximumf>, %85, %cst_34 [1] : vector<16x16xf32> to vector<16xf32>
    %87 = vector.shape_cast %86 : vector<16xf32> to vector<16x1xf32>
    %88 = vector.broadcast %87 : vector<16x1xf32> to vector<16x16xf32>
    %89 = arith.subf %85, %88 : vector<16x16xf32>
    %90 = math.exp %89 : vector<16x16xf32>
    %cst_35 = arith.constant dense<0.000000e+00> : vector<16xf32>
    %91 = vector.multi_reduction <add>, %90, %cst_35 [1] : vector<16x16xf32> to vector<16xf32>
    %92 = vector.shape_cast %91 : vector<16xf32> to vector<16x1xf32>
    %93 = tpu.reciprocal %92 {approx = true} : vector<16x1xf32> -> vector<16x1xf32>
    %94 = vector.broadcast %93 : vector<16x1xf32> to vector<16x16xf32>
    %95 = arith.mulf %90, %94 : vector<16x16xf32>
    %96 = arith.truncf %95 : vector<16x16xf32> to vector<16x16xbf16>
    %cst_36 = arith.constant dense<0.000000e+00> : vector<16x8xf32>
    %97 = tpu.matmul %96, %84, %cst_36 {dimension_numbers = #tpu.dot_dimension_numbers<[1], [0], [0], [1], [0, 0, 1, 1], [], []>} : vector<16x16xbf16>, vector<16x8xbf16>, vector<16x8xf32> -> vector<16x8xf32>
    %98 = arith.truncf %97 : vector<16x8xf32> to vector<16x8xbf16>
    %c16 = arith.constant 16 : index
    %c0_37 = arith.constant 0 : index
    %99 = vector.load %arg9[%c16, %c0_37] : memref<32x32xbf16, #tpu.memory_space<vmem>>, vector<8x32xbf16>
    %cst_38 = arith.constant dense<0.000000e+00> : vector<16x32xf32>
    %100 = tpu.matmul %98, %99, %cst_38 {dimension_numbers = #tpu.dot_dimension_numbers<[1], [0], [0], [1], [0, 0, 1, 1], [], []>} : vector<16x8xbf16>, vector<8x32xbf16>, vector<16x32xf32> -> vector<16x32xf32>
    %101 = arith.addf %80, %100 : vector<16x32xf32>
    %102 = vector.extract_strided_slice %35 {offsets = [0, 24], sizes = [16, 8], strides = [1, 1]} : vector<16x32xf32> to vector<16x8xf32>
    %103 = arith.truncf %102 : vector<16x8xf32> to vector<16x8xbf16>
    %104 = vector.extract_strided_slice %36 {offsets = [0, 24], sizes = [16, 8], strides = [1, 1]} : vector<16x32xbf16> to vector<16x8xbf16>
    %105 = vector.extract_strided_slice %37 {offsets = [0, 24], sizes = [16, 8], strides = [1, 1]} : vector<16x32xbf16> to vector<16x8xbf16>
    %cst_39 = arith.constant dense<0.000000e+00> : vector<16x16xf32>
    %106 = tpu.matmul %103, %104, %cst_39 {dimension_numbers = #tpu.dot_dimension_numbers<[1], [1], [0], [0], [0, 0, 1, 0], [], []>} : vector<16x8xbf16>, vector<16x8xbf16>, vector<16x16xf32> -> vector<16x16xf32>
    %cst_40 = arith.constant dense<0xFF800000> : vector<16xf32>
    %107 = vector.multi_reduction <maximumf>, %106, %cst_40 [1] : vector<16x16xf32> to vector<16xf32>
    %108 = vector.shape_cast %107 : vector<16xf32> to vector<16x1xf32>
    %109 = vector.broadcast %108 : vector<16x1xf32> to vector<16x16xf32>
    %110 = arith.subf %106, %109 : vector<16x16xf32>
    %111 = math.exp %110 : vector<16x16xf32>
    %cst_41 = arith.constant dense<0.000000e+00> : vector<16xf32>
    %112 = vector.multi_reduction <add>, %111, %cst_41 [1] : vector<16x16xf32> to vector<16xf32>
    %113 = vector.shape_cast %112 : vector<16xf32> to vector<16x1xf32>
    %114 = tpu.reciprocal %113 {approx = true} : vector<16x1xf32> -> vector<16x1xf32>
    %115 = vector.broadcast %114 : vector<16x1xf32> to vector<16x16xf32>
    %116 = arith.mulf %111, %115 : vector<16x16xf32>
    %117 = arith.truncf %116 : vector<16x16xf32> to vector<16x16xbf16>
    %cst_42 = arith.constant dense<0.000000e+00> : vector<16x8xf32>
    %118 = tpu.matmul %117, %105, %cst_42 {dimension_numbers = #tpu.dot_dimension_numbers<[1], [0], [0], [1], [0, 0, 1, 1], [], []>} : vector<16x16xbf16>, vector<16x8xbf16>, vector<16x8xf32> -> vector<16x8xf32>
    %119 = arith.truncf %118 : vector<16x8xf32> to vector<16x8xbf16>
    %c24 = arith.constant 24 : index
    %c0_43 = arith.constant 0 : index
    %120 = vector.load %arg9[%c24, %c0_43] : memref<32x32xbf16, #tpu.memory_space<vmem>>, vector<8x32xbf16>
    %cst_44 = arith.constant dense<0.000000e+00> : vector<16x32xf32>
    %121 = tpu.matmul %119, %120, %cst_44 {dimension_numbers = #tpu.dot_dimension_numbers<[1], [0], [0], [1], [0, 0, 1, 1], [], []>} : vector<16x8xbf16>, vector<8x32xbf16>, vector<16x32xf32> -> vector<16x32xf32>
    %122 = arith.addf %101, %121 : vector<16x32xf32>
    %123 = arith.addf %4, %122 : vector<16x32xf32>
    %c0_45 = arith.constant 0 : index
    %c0_46 = arith.constant 0 : index
    %124 = vector.load %arg10[%c0_45, %c0_46] : memref<1x32xf32, #tpu.memory_space<vmem>>, vector<1x32xf32>
    %125 = vector.broadcast %124 : vector<1x32xf32> to vector<16x32xf32>
    %126 = arith.addf %123, %125 : vector<16x32xf32>
    %c0_47 = arith.constant 0 : index
    %c0_48 = arith.constant 0 : index
    %127 = vector.load %arg11[%c0_47, %c0_48] : memref<1x32xf32, #tpu.memory_space<vmem>>, vector<1x32xf32>
    %c0_49 = arith.constant 0 : index
    %c0_50 = arith.constant 0 : index
    %128 = vector.load %arg12[%c0_49, %c0_50] : memref<1x32xf32, #tpu.memory_space<vmem>>, vector<1x32xf32>
    %cst_51 = arith.constant dense<0.000000e+00> : vector<16xf32>
    %129 = vector.multi_reduction <add>, %126, %cst_51 [1] : vector<16x32xf32> to vector<16xf32>
    %130 = vector.shape_cast %129 : vector<16xf32> to vector<16x1xf32>
    %cst_52 = arith.constant 3.200000e+01 : f32
    %131 = vector.broadcast %cst_52 : f32 to vector<16x1xf32>
    %132 = arith.divf %130, %131 : vector<16x1xf32>
    %133 = vector.broadcast %132 : vector<16x1xf32> to vector<16x32xf32>
    %134 = arith.subf %126, %133 : vector<16x32xf32>
    %135 = vector.broadcast %132 : vector<16x1xf32> to vector<16x32xf32>
    %136 = arith.subf %126, %135 : vector<16x32xf32>
    %137 = arith.mulf %134, %136 : vector<16x32xf32>
    %cst_53 = arith.constant dense<0.000000e+00> : vector<16xf32>
    %138 = vector.multi_reduction <add>, %137, %cst_53 [1] : vector<16x32xf32> to vector<16xf32>
    %139 = vector.shape_cast %138 : vector<16xf32> to vector<16x1xf32>
    %cst_54 = arith.constant 3.200000e+01 : f32
    %140 = vector.broadcast %cst_54 : f32 to vector<16x1xf32>
    %141 = arith.divf %139, %140 : vector<16x1xf32>
    %142 = vector.broadcast %132 : vector<16x1xf32> to vector<16x32xf32>
    %143 = arith.subf %126, %142 : vector<16x32xf32>
    %cst_55 = arith.constant 9.99999997E-7 : f32
    %144 = vector.broadcast %cst_55 : f32 to vector<16x1xf32>
    %145 = arith.addf %141, %144 : vector<16x1xf32>
    %146 = math.rsqrt %145 : vector<16x1xf32>
    %147 = vector.broadcast %146 : vector<16x1xf32> to vector<16x32xf32>
    %148 = arith.mulf %143, %147 : vector<16x32xf32>
    %149 = vector.broadcast %127 : vector<1x32xf32> to vector<16x32xf32>
    %150 = arith.mulf %148, %149 : vector<16x32xf32>
    %151 = vector.broadcast %128 : vector<1x32xf32> to vector<16x32xf32>
    %152 = arith.addf %150, %151 : vector<16x32xf32>
    %153 = arith.truncf %152 : vector<16x32xf32> to vector<16x32xbf16>
    %c0_56 = arith.constant 0 : index
    %c0_57 = arith.constant 0 : index
    %154 = vector.load %arg13[%c0_56, %c0_57] : memref<32x32xbf16, #tpu.memory_space<vmem>>, vector<32x32xbf16>
    %cst_58 = arith.constant dense<0.000000e+00> : vector<16x32xf32>
    %155 = tpu.matmul %153, %154, %cst_58 {dimension_numbers = #tpu.dot_dimension_numbers<[1], [0], [0], [1], [0, 0, 1, 1], [], []>} : vector<16x32xbf16>, vector<32x32xbf16>, vector<16x32xf32> -> vector<16x32xf32>
    %c0_59 = arith.constant 0 : index
    %c0_60 = arith.constant 0 : index
    %156 = vector.load %arg14[%c0_59, %c0_60] : memref<1x32xf32, #tpu.memory_space<vmem>>, vector<1x32xf32>
    %157 = vector.broadcast %156 : vector<1x32xf32> to vector<16x32xf32>
    %158 = arith.addf %155, %157 : vector<16x32xf32>
    %cst_61 = arith.constant 5.000000e-01 : f32
    %159 = vector.broadcast %cst_61 : f32 to vector<16x32xf32>
    %160 = arith.mulf %159, %158 : vector<16x32xf32>
    %cst_62 = arith.constant 4.471500e-02 : f32
    %161 = vector.broadcast %cst_62 : f32 to vector<16x32xf32>
    %162 = arith.mulf %161, %158 : vector<16x32xf32>
    %163 = arith.mulf %162, %158 : vector<16x32xf32>
    %164 = arith.mulf %163, %158 : vector<16x32xf32>
    %165 = arith.addf %158, %164 : vector<16x32xf32>
    %cst_63 = arith.constant 0.797884583 : f32
    %166 = vector.broadcast %cst_63 : f32 to vector<16x32xf32>
    %167 = arith.mulf %166, %165 : vector<16x32xf32>
    %168 = math.tanh %167 : vector<16x32xf32>
    %cst_64 = arith.constant 1.000000e+00 : f32
    %169 = vector.broadcast %cst_64 : f32 to vector<16x32xf32>
    %170 = arith.addf %169, %168 : vector<16x32xf32>
    %171 = arith.mulf %160, %170 : vector<16x32xf32>
    %172 = arith.truncf %171 : vector<16x32xf32> to vector<16x32xbf16>
    %c0_65 = arith.constant 0 : index
    %c0_66 = arith.constant 0 : index
    %173 = vector.load %arg15[%c0_65, %c0_66] : memref<32x32xbf16, #tpu.memory_space<vmem>>, vector<32x32xbf16>
    %cst_67 = arith.constant dense<0.000000e+00> : vector<16x32xf32>
    %174 = tpu.matmul %172, %173, %cst_67 {dimension_numbers = #tpu.dot_dimension_numbers<[1], [0], [0], [1], [0, 0, 1, 1], [], []>} : vector<16x32xbf16>, vector<32x32xbf16>, vector<16x32xf32> -> vector<16x32xf32>
    %c0_68 = arith.constant 0 : index
    %c0_69 = arith.constant 0 : index
    %175 = vector.load %arg16[%c0_68, %c0_69] : memref<1x32xf32, #tpu.memory_space<vmem>>, vector<1x32xf32>
    %176 = vector.broadcast %175 : vector<1x32xf32> to vector<16x32xf32>
    %177 = arith.addf %174, %176 : vector<16x32xf32>
    %178 = arith.addf %126, %177 : vector<16x32xf32>
    %c0_70 = arith.constant 0 : index
    %c0_71 = arith.constant 0 : index
    %c0_72 = arith.constant 0 : index
    %179 = vector.load %arg17[%c0_70, %c0_71, %c0_72] : memref<1x16x32xf32, #tpu.memory_space<vmem>>, vector<1x16x32xf32>
    %180 = vector.shape_cast %179 : vector<1x16x32xf32> to vector<16x32xf32>
    %181 = vector.shape_cast %178 : vector<16x32xf32> to vector<1x16x32xf32>
    tpu.vector_store %arg17[%c0_70, %c0_71, %c0_72], %181 {strides = array<i32>} : memref<1x16x32xf32, #tpu.memory_space<vmem>>, vector<1x16x32xf32>,
    return
  }
  func.func @transform_0(%arg0: i32, %arg1: i32) -> (i32, i32, i32) {
    %c0_i32 = arith.constant 0 : i32
    %c0_i32_0 = arith.constant 0 : i32
    return %arg0, %arg1, %c0_i32 : i32, i32, i32
  }
  func.func @transform_1(%arg0: i32, %arg1: i32) -> (i32, i32, i32) {
    %c0_i32 = arith.constant 0 : i32
    %c0_i32_0 = arith.constant 0 : i32
    %c0_i32_1 = arith.constant 0 : i32
    return %arg0, %c0_i32, %c0_i32_0 : i32, i32, i32
  }
  func.func @transform_2(%arg0: i32, %arg1: i32) -> (i32, i32) {
    %c0_i32 = arith.constant 0 : i32
    %c0_i32_0 = arith.constant 0 : i32
    %c0_i32_1 = arith.constant 0 : i32
    return %c0_i32, %c0_i32_0 : i32, i32
  }
  func.func @transform_3(%arg0: i32, %arg1: i32) -> (i32, i32) {
    %c0_i32 = arith.constant 0 : i32
    %c0_i32_0 = arith.constant 0 : i32
    %c0_i32_1 = arith.constant 0 : i32
    return %c0_i32, %c0_i32_0 : i32, i32
  }
  func.func @transform_4(%arg0: i32, %arg1: i32) -> (i32, i32) {
    %c0_i32 = arith.constant 0 : i32
    %c0_i32_0 = arith.constant 0 : i32
    %c0_i32_1 = arith.constant 0 : i32
    return %c0_i32, %c0_i32_0 : i32, i32
  }
  func.func @transform_5(%arg0: i32, %arg1: i32) -> (i32, i32) {
    %c0_i32 = arith.constant 0 : i32
    %c0_i32_0 = arith.constant 0 : i32
    %c0_i32_1 = arith.constant 0 : i32
    return %c0_i32, %c0_i32_0 : i32, i32
  }
  func.func @transform_6(%arg0: i32, %arg1: i32) -> (i32, i32) {
    %c0_i32 = arith.constant 0 : i32
    %c0_i32_0 = arith.constant 0 : i32
    %c0_i32_1 = arith.constant 0 : i32
    return %c0_i32, %c0_i32_0 : i32, i32
  }
  func.func @transform_7(%arg0: i32, %arg1: i32) -> (i32, i32) {
    %c0_i32 = arith.constant 0 : i32
    %c0_i32_0 = arith.constant 0 : i32
    %c0_i32_1 = arith.constant 0 : i32
    return %c0_i32, %c0_i32_0 : i32, i32
  }
  func.func @transform_8(%arg0: i32, %arg1: i32) -> (i32, i32) {
    %c0_i32 = arith.constant 0 : i32
    %c0_i32_0 = arith.constant 0 : i32
    %c0_i32_1 = arith.constant 0 : i32
    return %c0_i32, %c0_i32_0 : i32, i32
  }
  func.func @transform_9(%arg0: i32, %arg1: i32) -> (i32, i32) {
    %c0_i32 = arith.constant 0 : i32
    %c0_i32_0 = arith.constant 0 : i32
    %c0_i32_1 = arith.constant 0 : i32
    return %c0_i32, %c0_i32_0 : i32, i32
  }
  func.func @transform_10(%arg0: i32, %arg1: i32) -> (i32, i32) {
    %c0_i32 = arith.constant 0 : i32
    %c0_i32_0 = arith.constant 0 : i32
    %c0_i32_1 = arith.constant 0 : i32
    return %c0_i32, %c0_i32_0 : i32, i32
  }
  func.func @transform_11(%arg0: i32, %arg1: i32) -> (i32, i32) {
    %c0_i32 = arith.constant 0 : i32
    %c0_i32_0 = arith.constant 0 : i32
    %c0_i32_1 = arith.constant 0 : i32
    return %c0_i32, %c0_i32_0 : i32, i32
  }
  func.func @transform_12(%arg0: i32, %arg1: i32) -> (i32, i32) {
    %c0_i32 = arith.constant 0 : i32
    %c0_i32_0 = arith.constant 0 : i32
    %c0_i32_1 = arith.constant 0 : i32
    return %c0_i32, %c0_i32_0 : i32, i32
  }
  func.func @transform_13(%arg0: i32, %arg1: i32) -> (i32, i32) {
    %c0_i32 = arith.constant 0 : i32
    %c0_i32_0 = arith.constant 0 : i32
    %c0_i32_1 = arith.constant 0 : i32
    return %c0_i32, %c0_i32_0 : i32, i32
  }
  func.func @transform_14(%arg0: i32, %arg1: i32) -> (i32, i32) {
    %c0_i32 = arith.constant 0 : i32
    %c0_i32_0 = arith.constant 0 : i32
    %c0_i32_1 = arith.constant 0 : i32
    return %c0_i32, %c0_i32_0 : i32, i32
  }
  func.func @transform_15(%arg0: i32, %arg1: i32) -> (i32, i32, i32) {
    %c0_i32 = arith.constant 0 : i32
    %c0_i32_0 = arith.constant 0 : i32
    return %arg0, %arg1, %c0_i32 : i32, i32, i32
  }
}

</mosaic_0001>

<bundles_post_ra>
// kernel: tpu_custom_call.1
= control target key start
LH: loop header
LB: loop body
LE: loop exit
PB: predicated region body
PF: predicated region fallthrough
CT: control target
= control target key end

     0   :  { %s2769_s0 = inlined_call_operand.hbm [shape: f32[2,16,32], index: 0, kind: input, shape index: {}]   ;;  %s2770_s1 = inlined_call_operand.hbm [shape: f32[2,16,32], index: 1, kind: input, shape index: {}]   ;;  %s2771_s2 = inlined_call_operand.vmem [shape: f32[1,32], index: 2, kind: input, shape index: {}]   ;;  %s2772_s3 = inlined_call_operand.vmem [shape: f32[1,32], index: 3, kind: input, shape index: {}]   ;;  %s2773_s4 = inlined_call_operand.hbm [shape: bf16[32,32], index: 4, kind: input, shape index: {}]   ;;  %s2774_s5 = inlined_call_operand.hbm [shape: bf16[32,32], index: 5, kind: input, shape index: {}]   ;;  %s2775_s6 = inlined_call_operand.hbm [shape: bf16[32,32], index: 6, kind: input, shape index: {}]   ;;  %s2776_s7 = inlined_call_operand.hbm [shape: bf16[32,32], index: 7, kind: input, shape index: {}]   ;;  %s2777_s8 = inlined_call_operand.vmem [shape: f32[1,32], index: 8, kind: input, shape index: {}]   ;;  %s2778_s9 = inlined_call_operand.vmem [shape: f32[1,32], index: 9, kind: input, shape index: {}]   ;;  %s2779_s10 = inlined_call_operand.vmem [shape: f32[1,32], index: 10, kind: input, shape index: {}]   ;;  %s2780_s11 = inlined_call_operand.hbm [shape: bf16[32,32], index: 11, kind: input, shape index: {}]   ;;  %s2781_s12 = inlined_call_operand.vmem [shape: f32[1,32], index: 12, kind: input, shape index: {}]   ;;  %s2782_s13 = inlined_call_operand.hbm [shape: bf16[32,32], index: 13, kind: input, shape index: {}]   ;;  %s2783_s14 = inlined_call_operand.vmem [shape: f32[1,32], index: 14, kind: input, shape index: {}]   ;;  %s2784_s15 = inlined_call_operand.hbm [shape: f32[2,16,32], index: 15, kind: output, shape index: {}]  }
   0x1   :  { %2789 = sst [smem:[#allocation31_spill]] %s2773_s4 }
   0x2   :  { %2790 = sst [smem:[#allocation32_spill]] %s2774_s5 }
   0x3   :  { %2791 = sst [smem:[#allocation33_spill]] %s2775_s6 }
   0x4   :  { %2792 = sst [smem:[#allocation34_spill]] %s2776_s7 }
   0x5   :  { %2793 = sst [smem:[#allocation35_spill]] %s2778_s9 }
   0x6   :  { %2794 = sst [smem:[#allocation36_spill]] %s2779_s10 }
   0x7   :  { %2795 = sst [smem:[#allocation37_spill]] %s2780_s11 }
   0x8   :  { %2796 = sst [smem:[#allocation38_spill]] %s2781_s12 }
   0x9   :  { %2797 = sst [smem:[#allocation39_spill]] %s2782_s13 }
   0xa   :  { %2798 = sst [smem:[#allocation40_spill]] %s2783_s14 }
   0xb   :  { %2799 = sst [smem:[#allocation41_spill]] %s2784_s15 }
   0xc   :  { %20 = vsyncpa [#allocation5], 0 }
   0xd   :  { %22 = vsyncpa [#allocation5 + $0x1], 0 }
   0xe   :  { %23 = vsyncpa [#allocation8], 0 }
   0xf   :  { %25 = vsyncpa [#allocation8 + $0x1], 0 }
  0x10   :  { %26 = vsyncpa [#allocation11], 0 }
  0x11   :  { %27 = vsyncpa [#allocation14], 0 }
  0x12   :  { %28 = vsyncpa [#allocation17], 0 }
  0x13   :  { %29 = vsyncpa [#allocation6], 0 }
  0x14   :  { %31 = vsyncpa [#allocation6 + $0x1], 0  ;;  %s2390_s18 = smov 0   ;;  %s2392_s19 = smov 0  }
  0x15   :  { %s2394_s20 = smov 0   ;;  %s2396_s21 = smov 0  }
  0x16   :  { %s2398_s22 = smov 0   ;;  %s2400_s23 = smov 0  }
  0x17 LB: > { %2800 = sst [smem:[#allocation26_spill]] %s2280_s20  ;;  %s2421_s24 = sadd.s32 4294967295, %s2292_s23   ;;  %s2292_s23 = sphi %s2400_s23, %s37_s23   ;;  %s2288_s22 = sphi %s2398_s22, %s2826_s22   ;;  %s2284_s21 = sphi %s2396_s21, %s2825_s21   ;;  %s2280_s20 = sphi %s2394_s20, %s2824_s20   ;;  %s2276_s19 = sphi %s2392_s19, %s2828_s19   ;;  %s2272_s18 = sphi %s2390_s18, %s2827_s18  }
  0x18   : > { %2801 = sst [smem:[#allocation27_spill]] %s2284_s21  ;;  %p1644_p0 = scmp.ge.s32.totalorder %s2292_s23, 1 }
  0x19   : > { %2802 = sst [smem:[#allocation28_spill]] %s2288_s22  ;;  %p72_p1 = scmp.eq.s32.totalorder %s2421_s24, 0 }
  0x1a   : > { %p409_p2 = scmp.lt.s32.totalorder %s2292_s23, 3  ;;  %s2803_s4 = sld [smem:[#allocation31_spill]] }
  0x1b   : > { %s2294_s29 = smov [#allocation9]   ;;  %p1651_p6 = scmp.ge.s32.totalorder %s2292_s23, 2 }
  0x1c   : > { %p2429_p3 = pnand %p1644_p0, %p409_p2  ;;  %s428_s30 = sshll.u32 %s2294_s29, 4  ;;  %s429_s30 = int_to_ptr.vmem [resolvable:$true] %s428_s30 }
  0x1d   : > { %s2806_s5 = sld [smem:[#allocation32_spill]]  ;;  %s2296_s15 = smov 4  }
  0x1e   : > { %p1783_p4 = pneg %p2429_p3  ;;  %s2297_s29 = smov [#allocation10]  }
  0x1f   : > { %s442_s14 = sshll.u32 %s2297_s29, 4  ;;  %s2807_s7 = sld [smem:[#allocation34_spill]]  ;;  %s443_s14 = int_to_ptr.vmem [resolvable:$true] %s442_s14 }
  0x20   : > { %s426_s27 = sshll.u32 %s2803_s4, 4  ;;  %p2437_p5 = pnand %p1783_p4, %p72_p1  ;;  %s427_s27 = int_to_ptr.hbm [resolvable:$true] %s426_s27 }
  0x21   : > { %s2295_s4 = smov 64   ;;  %s2808_s6 = sld [smem:[#allocation33_spill]] }
  0x22   : > { %1786 = dma.hbm_to_vmem [thread:$0]  (!%p2437_p5), %s427_s27, 256, %s429_s30, [#allocation8], %s2295_s4, %s2295_s4, %s2296_s15  }
  0x23   : > { %s440_s26 = sshll.u32 %s2806_s5, 4  ;;  %s2298_s9 = smov [#allocation13]   ;;  %s441_s26 = int_to_ptr.hbm [resolvable:$true] %s440_s26 }
  0x24   : > { %1789 = dma.hbm_to_vmem [thread:$0]  (!%p2437_p5), %s441_s26, 256, %s443_s14, [#allocation11], %s2295_s4, %s2295_s4, %s2296_s15  }
  0x25   : > { %s468_s10 = sshll.u32 %s2807_s7, 4  ;;  %s470_s27 = sshll.u32 %s2298_s9, 4  ;;  %s469_s10 = int_to_ptr.hbm [resolvable:$true] %s468_s10  ;;  %s471_s27 = int_to_ptr.vmem [resolvable:$true] %s470_s27 }
  0x26   : > { %1795 = dma.hbm_to_vmem [thread:$0]  (!%p2437_p5), %s469_s10, 256, %s471_s27, [#allocation14], %s2295_s4, %s2295_s4, %s2296_s15  }
  0x27   : > { %s454_s5 = sshll.u32 %s2808_s6, 4  ;;  %s2299_s12 = smov [#allocation12]   ;;  %s455_s5 = int_to_ptr.hbm [resolvable:$true] %s454_s5 }
  0x28   : > { %s456_s21 = sshll.u32 %s2299_s12, 4  ;;  %s2809_s11 = sld [smem:[#allocation37_spill]]  ;;  %s457_s21 = int_to_ptr.vmem [resolvable:$true] %s456_s21 }
  0x29   : > { %1792 = dma.hbm_to_vmem [thread:$0]  (!%p2437_p5), %s455_s5, 256, %s457_s21, [#allocation11], %s2295_s4, %s2295_s4, %s2296_s15  }
  0x2a   : > { %s2810_s13 = sld [smem:[#allocation39_spill]]  ;;  %s2300_s17 = smov [#allocation15]  }
  0x2b   : > { %s493_s25 = sshll.u32 %s2300_s17, 4  ;;  %s2301_s27 = smov [#allocation16]   ;;  %s494_s25 = int_to_ptr.vmem [resolvable:$true] %s493_s25 }
  0x2c   : > { %s510_s5 = sshll.u32 %s2301_s27, 4  ;;  %s1643_s12 = sadd.s32 4294967294, %s2292_s23   ;;  %s511_s5 = int_to_ptr.vmem [resolvable:$true] %s510_s5 }
  0x2d   : > { %s49_s21 = sadd.s32 1, %s2288_s22  ;;  %s58_s30 = sadd.s32 1, %s2280_s20 }
  0x2e   : > { %s491_s26 = sshll.u32 %s2809_s11, 4  ;;  %p51_p7 = scmp.ge.s32.totalorder %s49_s21, 2  ;;  %s492_s26 = int_to_ptr.hbm [resolvable:$true] %s491_s26 }
  0x2f   : > { %1798 = dma.hbm_to_vmem [thread:$0]  (!%p2437_p5), %s492_s26, 256, %s494_s25, [#allocation14], %s2295_s4, %s2295_s4, %s2296_s15  }
  0x30   : > { %s508_s29 = sshll.u32 %s2810_s13, 4  ;;  %p65_p8 = scmp.ne.s32.totalorder %s2280_s20, %s2276_s19  ;;  %s509_s29 = int_to_ptr.hbm [resolvable:$true] %s508_s29 }
  0x31   : > { %1801 = dma.hbm_to_vmem [thread:$0]  (!%p2437_p5), %s509_s29, 256, %s511_s5, [#allocation17], %s2295_s4, %s2295_s4, %s2296_s15  }
  0x32   : > { %p66_p9 = scmp.eq.s32.totalorder %s2292_s23, 0  ;;  %s2830_s21 = smov (%p51_p7, %s49_s21), 0 }
  0x33   : > { %2811 = sst [smem:[#allocation29_spill]] %s2830_s21  ;;  %p71_p11 = scmp.ne.s32.totalorder %s2276_s19, %s2272_s18 }
  0x34   : > { %p2495_p10 = por %p66_p9, %p65_p8  ;;  %s53_s16 = ssub.s32 %s2288_s22, %s2830_s21 }
  0x35   : > { %p396_p12 = scmp.eq.s32.totalorder %s2421_s24, 1  ;;  %p56_p13 = scmp.eq.s32.totalorder %s53_s16, 0 }
  0x36   : > { %p2506_p0 = por %p72_p1, %p71_p11  ;;  %p402_p4 = scmp.eq.s32.totalorder %s1643_s12, 1 }
  0x37   : > { %p2510_p2 = por %p396_p12, %p65_p8  ;;  %p1819_p7 = scmp.lt.s32.totalorder %s2292_s23, 2 }
  0x38   : > { %s2515_s26 = scalar_select %p56_p13, %s2280_s20, %s58_s30  }
  0x39   : > { %p2517_p5 = por %p402_p4, %p71_p11  ;;  %s527_s10 = sand.u32 1, %s2280_s20  }
  0x3a   : > { %2815 = sst [smem:[#allocation30_spill]] %s2515_s26  ;;  %s1738_s29 = sshll.u32 %s2288_s22, 4 }
  0x3b   : > { %s1652_s17 = sshll.u32 %s527_s10, 4  ;;  %s538_s5 = scalar_lea.hbm %s2769_s0, %s1738_s29 }
  0x3c   : > { %s539_s16 = sshll.u32 %s538_s5, 4  ;;  %s531_s6 = scalar_lea.vmem [#allocation4], %s1652_s17  ;;  %s540_s16 = int_to_ptr.hbm [resolvable:$true] %s539_s16 }
  0x3d   : > { %s541_s7 = sshll.u32 %s531_s6, 4  ;;  %p1803_p8 = pnand %p1819_p7, %p2495_p10  ;;  %s542_s7 = int_to_ptr.vmem [resolvable:$true] %s541_s7 }
  0x3e   : > { %s560_s11 = scalar_lea.hbm %s2770_s1, %s1738_s29  ;;  %s528_s13 = scalar_lea.sflag [#allocation5], %s527_s10 }
  0x3f   : > { %s2302_s21 = smov 128   ;;  %s2303_s22 = smov 8  }
  0x40   : > { %1805 = dma.hbm_to_vmem [thread:$0]  (!%p1803_p8), %s540_s16, 256, %s542_s7, %s528_s13, %s2302_s21, %s2302_s21, %s2303_s22  }
  0x41   : > { %s561_s26 = sshll.u32 %s560_s11, 4  ;;  %s555_s20 = scalar_lea.vmem [#allocation7], %s1652_s17  ;;  %s562_s26 = int_to_ptr.hbm [resolvable:$true] %s561_s26 }
  0x42   : > { %s563_s25 = sshll.u32 %s555_s20, 4  ;;  %s551_s27 = sand.u32 1, %s2292_s23   ;;  %s564_s25 = int_to_ptr.vmem [resolvable:$true] %s563_s25 }
  0x43   : > { %s552_s5 = scalar_lea.sflag [#allocation8], %s551_s27  ;;  %575 = sbr.rel (%p2429_p3) target bundleno = 2324 (0x914), region = 80 }
  0x44   : > { %1808 = dma.hbm_to_vmem [thread:$0]  (!%p1803_p8), %s562_s26, 256, %s564_s25, %s552_s5, %s2302_s21, %s2302_s21, %s2303_s22  }
  0x45   : > { %s2536_s6 = sand.u32 (!%p2429_p3), 1, %s2276_s19  }
  0x46   : > { %s2539_s14 = sshll.u32 (!%p2429_p3), %s2536_s6, 4  ;;  %s578_s7 = scalar_lea.sflag (!%p2429_p3), [#allocation5], %s2536_s6 }
  0x47   : > { %s581_s11 = scalar_lea.vmem (!%p2429_p3), [#allocation4], %s2539_s14 }
  0x48   : > { %2243 = dma.done.wait (%p2506_p0), %s578_s7, 256  }
  0x49   : > { %2245 = vsyncadd (%p2506_p0), %s578_s7, 4294967040  ;;  %s587_s13 = sand.u32 1, %s2421_s24   ;;  %s591_s22 = scalar_lea.vmem [#allocation7], %s2539_s14 }
  0x4a   : > { %s588_s20 = scalar_lea.sflag [#allocation8], %s587_s13 }
  0x4b   : > { %2247 = dma.done.wait (%p2506_p0), %s588_s20, 256  }
  0x4c   : > { %2249 = vsyncadd (%p2506_p0), %s588_s20, 4294967040 }
  0x4d   : > { %2251 = dma.done.wait (%p72_p1), [#allocation8], 256  }
  0x4e   : > { %2253 = vsyncadd (%p72_p1), [#allocation8], 4294967040 }
  0x4f   : > { %2255 = dma.done.wait (%p72_p1), [#allocation11], 512  }
  0x50   : > { %2257 = vsyncadd (%p72_p1), [#allocation11], 4294966784 }
  0x51   : > { %2259 = dma.done.wait (%p72_p1), [#allocation14], 512  }
  0x52   : > { %2261 = vsyncadd (%p72_p1), [#allocation14], 4294966784 }
  0x53   : > { %2263 = dma.done.wait (%p72_p1), [#allocation17], 256  }
  0x54   : > { %2265 = vsyncadd (%p72_p1), [#allocation17], 4294967040  ;;  %vm685_vm0 = vcmask 261120   ;;  %v2569_v0 = vld [vmem:[%s581_s11] sm:$0xff]  ;;  %v2574_v4 = vld [vmem:[%s581_s11 + $0x8] sm:$0xff]  ;;  %v2304_v8 = vmov 32.0  }
  0x55   : > { %v681_v1 = vld [vmem:[%s591_s22] sm:$0xff]  ;;  %v825_v2 = vsel %vm685_vm0, %v2569_v0, 0.0  ;;  %v682_v5 = vld [vmem:[%s591_s22 + $0x8] sm:$0xff]  ;;  %v828_v6 = vsel %vm685_vm0, %v2574_v4, 0.0  ;;  %1900 = vrcp.f32 %v2304_v8  ;;  %vm783_vm14 = vcmask 257024   ;;  %s2305_s16 = smov 120  }
  0x56   : > { %v686_v3 = vsel %vm685_vm0, %v681_v1, 0.0  ;;  %826 = vadd.xlane.f32.xlu1 %v825_v2  ;;  %v689_v7 = vsel %vm685_vm0, %v682_v5, 0.0  ;;  %v1741_v35 = vld [vmem:[#allocation10 + $0x8] sm:$0xff]  ;;  %v1743_v36 = vld [vmem:[#allocation12 + $0x8] sm:$0xff]  ;;  %v1740_v42 = vld [vmem:[#allocation10] sm:$0xff]  ;;  %vm932_vm15 = vcmask 64512  }
  0x57   : > { %687 = vadd.xlane.f32.xlu0 %v686_v3  ;;  %v1745_v37 = vld [vmem:[#allocation9 + $0x8] sm:$0xff]  ;;  %773 = vmatpush.bf16.msra.mxu0 %v1741_v35  ;;  %v1742_v43 = vld [vmem:[#allocation12] sm:$0xff]  ;;  %s2306_s12 = smov 112   ;;  %s2307_s30 = smov 104  }
  0x58   : > { %808 = vmatpush.bf16.msra.mxu1 %v1743_v36  ;;  %912 = vmatpush.bf16.msra.mxu2 %v1745_v37  ;;  %v1744_v44 = vld [vmem:[#allocation9] sm:$0xff]  ;;  %s2817_s11 = sld [smem:[#allocation35_spill]]  ;;  %s673_s27 = scalar_lea.vmem [#allocation18], %s2539_s14 }
  0x59   : > { %s2818_s22 = sld [smem:[#allocation36_spill]]  ;;  %s1472_s5 = sshll.u32 %s673_s27, 4  ;;  %s1473_s5 = int_to_ptr.vmem [resolvable:$true] %s1472_s5 }
  0x5a   : > { %s2819_s21 = sld [smem:[#allocation38_spill]] }
  0x5b   : > { %v1901_v9 = vpop.eup %1900  ;;  %774 = vmatpush.bf16.msra.mxu0 %v1740_v42  ;;  %s2820_s4 = sld [smem:[#allocation27_spill]] }
  0x5c   : > { %v693_v10 = vmul.f32 32.0, %v1901_v9  ;;  %vm697_vm1 = vweird.f32 %v1901_v9  ;;  %809 = vmatpush.bf16.msra.mxu1 %v1742_v43  ;;  %913 = vmatpush.bf16.msra.mxu2 %v1744_v44  ;;  %s2821_s29 = sld [smem:[#allocation40_spill]] }
  0x5e   : > { %829 = vadd.xlane.f32.xlu1 %v828_v6  ;;  %v694_v11 = vsub.f32 1.0, %v693_v10 }
  0x5f   : > { %690 = vadd.xlane.f32.xlu0 %v689_v7 }
  0x60   : > { %v695_v12 = vmul.f32 %v1901_v9, %v694_v11 }
  0x61   : > { %s1752_s17 = sshll.u32 %s2820_s4, 4 }
  0x62   : > { %v696_v13 = vadd.f32 %v1901_v9, %v695_v12 }
  0x64   : > { %v2579_v14 = vsel %vm697_vm1, %v1901_v9, %v696_v13  ;;  %vm953_vm1 = vcmask 130048  }
  0xc9   : > { %v827_v15 = vpop.xlane.xlu1 %826 }
  0xca   : > { %v688_v16 = vpop.xlane.xlu0 %687  ;;  %v838_v17 = vmul.f32 %v827_v15, %v2579_v14 }
  0xcb   : > { %v699_v18 = vmul.f32 %v2579_v14, %v688_v16 }
  0xcc   : > { %v2584_v19 = vsub.f32 %v2569_v0, %v838_v17  ;;  %v1893_v17 = vld [vmem:[%s2771_s2] ss:$0 sm:$0xff] }
  0xcd   : > { %v2586_v20 = vsub.f32 %v681_v1, %v699_v18 }
  0xce   : > { %v842_v21 = vmul.f32 %v2584_v19, %v2584_v19 }
  0xcf   : > { %v703_v22 = vmul.f32 %v2586_v20, %v2586_v20 }
  0xd0   : > { %v844_v23 = vsel %vm685_vm0, %v842_v21, 0.0 }
  0xd1   : > { %v705_v24 = vsel %vm685_vm0, %v703_v22, 0.0  ;;  %v830_v25 = vpop.xlane.xlu1 %829  ;;  %845 = vadd.xlane.f32.xlu0 %v844_v23  ;;  %v1891_v22 = vld [vmem:[%s2771_s2] ss:$0 sm:$0xff] }
  0xd2   : > { %706 = vadd.xlane.f32.xlu2 %v705_v24  ;;  %v691_v26 = vpop.xlane.xlu0 %690  ;;  %v839_v27 = vmul.f32 %v830_v25, %v2579_v14 }
  0xd3   : > { %v700_v28 = vmul.f32 %v2579_v14, %v691_v26 }
  0xd4   : > { %v2597_v29 = vsub.f32 %v2574_v4, %v839_v27  ;;  %v1894_v27 = vld [vmem:[%s2772_s3] ss:$0 sm:$0xff] }
  0xd5   : > { %v2599_v30 = vsub.f32 %v682_v5, %v700_v28 }
  0xd6   : > { %v843_v31 = vmul.f32 %v2597_v29, %v2597_v29 }
  0xd7   : > { %v704_v32 = vmul.f32 %v2599_v30, %v2599_v30 }
  0xd8   : > { %v847_v33 = vsel %vm685_vm0, %v843_v31, 0.0  ;;  %v1892_v31 = vld [vmem:[%s2772_s3] ss:$0 sm:$0xff] }
  0xd9   : > { %v708_v34 = vsel %vm685_vm0, %v704_v32, 0.0  ;;  %848 = vadd.xlane.f32.xlu1 %v847_v33 }
  0xda   : > { %709 = vadd.xlane.f32.xlu2 %v708_v34 }
 0x144   : > { %v846_v39 = vpop.xlane.xlu0 %845 }
 0x145   : > { %v707_v38 = vpop.xlane.xlu2 %706  ;;  %v850_v41 = vmul.f32 %v846_v39, %v2579_v14 }
 0x146   : > { %v711_v40 = vmul.f32 %v707_v38, %v2579_v14 }
 0x147   : > { %v852_v46 = vadd.f32 1e-06, %v850_v41 }
 0x148   : > { %v713_v45 = vadd.f32 1e-06, %v711_v40 }
 0x149   : > { %vm860_vm2 = vweird.f32 %v852_v46 }
 0x14a   : > { %1902 = vrsqrt.f32 %v713_v45  ;;  %vm721_vm5 = vweird.f32 %v713_v45 }
 0x14b   : > { %1904 = vrsqrt.f32 %v852_v46 }
 0x14c   : > { %v849_v47 = vpop.xlane.xlu1 %848 }
 0x14d   : > { %v710_v48 = vpop.xlane.xlu2 %709  ;;  %v851_v49 = vmul.f32 %v849_v47, %v2579_v14 }
 0x14e   : > { %v712_v50 = vmul.f32 %v710_v48, %v2579_v14 }
 0x14f   : > { %v853_v52 = vadd.f32 1e-06, %v851_v49 }
 0x150   : > { %v1903_v51 = vpop.eup %1902  ;;  %v714_v53 = vadd.f32 1e-06, %v712_v50 }
 0x151   : > { %v1905_v54 = vpop.eup %1904  ;;  %v716_v55 = vmul.f32 %v1903_v51, %v713_v45  ;;  %1906 = vrsqrt.f32 %v853_v52  ;;  %vm722_vm4 = vweird.f32 %v1903_v51  ;;  %vm870_vm8 = vweird.f32 %v853_v52 }
 0x152   : > { %v855_v56 = vmul.f32 %v1905_v54, %v852_v46  ;;  %1908 = vrsqrt.f32 %v714_v53  ;;  %vm861_vm3 = vweird.f32 %v1905_v54  ;;  %vm723_vm7 = vmor %vm721_vm5, %vm722_vm4  ;;  %vm731_vm12 = vweird.f32 %v714_v53 }
 0x153   : > { %v717_v57 = vmul.f32 %v1903_v51, %v716_v55  ;;  %vm862_vm6 = vmor %vm860_vm2, %vm861_vm3  ;;  %vm1075_vm2 = vcmask 1043456  }
 0x154   : > { %v856_v58 = vmul.f32 %v1905_v54, %v855_v56 }
 0x155   : > { %v718_v59 = vmul.f32 0.5, %v717_v57 }
 0x156   : > { %v857_v60 = vmul.f32 0.5, %v856_v58 }
 0x157   : > { %v719_v61 = vsub.f32 1.5, %v718_v59  ;;  %v1907_v62 = vpop.eup %1906 }
 0x158   : > { %v858_v63 = vsub.f32 1.5, %v857_v60  ;;  %v1909_v1 = vpop.eup %1908  ;;  %v865_v2 = vmul.f32 %v1907_v62, %v853_v52  ;;  %vm871_vm9 = vweird.f32 %v1907_v62 }
 0x159   : > { %v720_v3 = vmul.f32 %v1903_v51, %v719_v61  ;;  %v726_v6 = vmul.f32 %v1909_v1, %v714_v53  ;;  %vm732_vm10 = vweird.f32 %v1909_v1  ;;  %vm872_vm11 = vmor %vm870_vm8, %vm871_vm9 }
 0x15a   : > { %v859_v5 = vmul.f32 %v1905_v54, %v858_v63  ;;  %v866_v7 = vmul.f32 %v1907_v62, %v865_v2  ;;  %vm733_vm13 = vmor %vm731_vm12, %vm732_vm10 }
 0x15b   : > { %v727_v8 = vmul.f32 %v1909_v1, %v726_v6  ;;  %v724_v11 = vsel %vm723_vm7, %v1903_v51, %v720_v3 }
 0x15c   : > { %v863_v9 = vsel %vm862_vm6, %v1905_v54, %v859_v5  ;;  %v867_v10 = vmul.f32 0.5, %v866_v7  ;;  %v735_v18 = vmul.f32 %v724_v11, %v2586_v20 }
 0x15d   : > { %v728_v12 = vmul.f32 0.5, %v727_v8  ;;  %v874_v15 = vmul.f32 %v863_v9, %v2584_v19  ;;  %v1001_v8 = vld [vmem:[#allocation13] sm:$0xf] }
 0x15e   : > { %v868_v13 = vsub.f32 1.5, %v867_v10  ;;  %v740_v28 = vmul.f32 %v1891_v22, %v735_v18  ;;  %v1097_v9 = vsel %vm1075_vm2, %v1001_v8, 0 }
 0x15f   : > { %v729_v16 = vsub.f32 1.5, %v728_v12  ;;  %v879_v26 = vmul.f32 %v1893_v17, %v874_v15 }
 0x160   : > { %v869_v21 = vmul.f32 %v1907_v62, %v868_v13  ;;  %v745_v36 = vadd.f32 %v1892_v31, %v740_v28 }
 0x161   : > { %v730_v23 = vmul.f32 %v1909_v1, %v729_v16  ;;  %v884_v34 = vadd.f32 %v1894_v27, %v879_v26 }
 0x162   : > { %v873_v24 = vsel %vm872_vm11, %v1907_v62, %v869_v21 }
 0x163   : > { %v875_v19 = vmul.f32 %v873_v24, %v2597_v29  ;;  %v734_v25 = vsel %vm733_vm13, %v1909_v1, %v730_v23 }
 0x164   : > { %v736_v20 = vmul.f32 %v734_v25, %v2599_v30 }
 0x165   : > { %v880_v32 = vmul.f32 %v1893_v17, %v875_v19 }
 0x166   : > { %v741_v33 = vmul.f32 %v1891_v22, %v736_v20 }
 0x167   : > { %v885_v35 = vadd.f32 %v1894_v27, %v880_v32 }
 0x168   : > { %v746_v37 = vadd.f32 %v1892_v31, %v741_v33 }
 0x169   : > { %v886_v29 = vpack.c.bf16 %v885_v35, %v884_v34 }
 0x16a   : > { %v747_v38 = vpack.c.bf16 %v746_v37, %v745_v36 }
 0x16b   : > { %1694 = vmatmul.msk.bf16.vlgmr.msra.gmra.mxu2 %vm685_vm0, %v886_v29 }
 0x16c   : > { %1676 = vmatmul.msk.bf16.vlgmr.msra.gmra.mxu0 %vm685_vm0, %v747_v38  ;;  %1685 = vmatmul.msk.bf16.vlgmr.msra.gmra.mxu1 %vm685_vm0, %v747_v38 }
 0x1e9   : > { %v776_v30 = vpop.f32.mrf.mxu0  ;;  %v811_v39 = vpop.f32.mrf.mxu1 }
 0x1ea   : > { %v781_v40 = vpack.c.bf16 %v776_v30, %v776_v30  ;;  %v816_v41 = vpack.c.bf16 %v811_v39, %v811_v39 }
 0x1ec   : > { %784 = vst.msk [vmem:[#allocation2] sm:$0xf] %vm783_vm14, %v781_v40 }
 0x1ed   : > { %818 = vst.msk [vmem:[#allocation3] sm:$0xf] %vm783_vm14, %v816_v41 }
 0x1ee   : > { %v915_v44 = vpop.f32.mrf.mxu2 }
 0x1ef   : > { %v920_v52 = vmul.f32 0.35355338, %v915_v44 }
 0x1f1   : > { %v778_v42 = vpop.f32.mrf.mxu0  ;;  %v813_v43 = vpop.f32.mrf.mxu1 }
 0x1f2   : > { %v782_v45 = vpack.c.bf16 %v778_v42, %v778_v42  ;;  %v817_v46 = vpack.c.bf16 %v813_v43, %v813_v43 }
 0x1f4   : > { %785 = vst.msk [vmem:[#allocation2 + $0x4] sm:$0xf] %vm783_vm14, %v782_v45 }
 0x1f5   : > { %819 = vst.msk [vmem:[#allocation3 + $0x4] sm:$0xf] %vm783_vm14, %v817_v46 }
 0x1f6   : > { %v917_v48 = vpop.f32.mrf.mxu2 }
 0x1f7   : > { %v921_v51 = vmul.f32 0.35355338, %v917_v48 }
 0x1f9   : > { %v926_v53 = vpack.c.bf16 %v921_v51, %v920_v52 }
 0x1fb   : > { %v1746_v47 = vld [vmem:[#allocation2] sm:$0xff] }
 0x1fc   : > { %v2630_v49 = vld [vmem:[#allocation3] sm:$0xff]  ;;  %v937_v50 = vsel %vm932_vm15, %v1746_v47, 0 }
 0x1fd   : > { %993 = vmatpush.bf16.msrb.mxu0 %v2630_v49  ;;  %946 = vmatpush.bf16.xpose.msra.mxu3 %v937_v50 }
 0x201   : > { %1106 = vmatpush.bf16.msra.mxu0 %v1097_v9 }
 0x204   : > { %1699 = vmatmul.msk.bf16.vlgmr.msra.gmra.mxu3 %vm932_vm15, %v926_v53 }
 0x287   : > { %v948_v54 = vpop.f32.mrf.mxu3 }
 0x288   : > { %v954_v55 = vsel %vm953_vm1, %v948_v54, -inf }
 0x289   : > { %955 = vmax.xlane.f32.xlu2 %v954_v55 }
 0x28f   : > { %v950_v56 = vpop.f32.mrf.mxu3 }
 0x290   : > { %v957_v57 = vsel %vm953_vm1, %v950_v56, -inf }
 0x291   : > { %958 = vmax.xlane.f32.xlu0 %v957_v57 }
 0x2a5   : > { %1005 = vrot.lane.b32.xlu0 %v1746_v47, %s2305_s16 }
 0x2ad   : > { %1113 = vrot.lane.b32.xlu0 %v926_v53, %s2306_s12 }
 0x2fc   : > { %v956_v58 = vpop.xlane.xlu2 %955 }
 0x2fd   : > { %v960_v59 = vsub.f32 %v948_v54, %v956_v58 }
 0x2ff   : > { %v962_v60 = vmul.f32 1.442695, %v960_v59 }
 0x301   : > { %1910 = vpow2.f32 %v962_v60 }
 0x304   : > { %v959_v61 = vpop.xlane.xlu0 %958 }
 0x305   : > { %v961_v62 = vsub.f32 %v950_v56, %v959_v61 }
 0x307   : > { %v1911_v63 = vpop.eup %1910  ;;  %v964_v1 = vmul.f32 1.442695, %v961_v62 }
 0x308   : > { %v966_v2 = vsel %vm953_vm1, %v1911_v63, 0.0 }
 0x309   : > { %1912 = vpow2.f32 %v964_v1  ;;  %967 = vadd.xlane.f32.xlu1 %v966_v2 }
 0x30f   : > { %v1913_v3 = vpop.eup %1912 }
 0x310   : > { %v969_v5 = vsel %vm953_vm1, %v1913_v3, 0.0 }
 0x311   : > { %970 = vadd.xlane.f32.xlu2 %v969_v5 }
 0x317   : > { %v1006_v6 = vpop.permute.xlu0 %1005 }
 0x318   : > { %v1011_v7 = vsel %vm932_vm15, %v1006_v6, 0 }
 0x319   : > { %1020 = vmatpush.bf16.xpose.msrb.mxu1 %v1011_v7 }
 0x31f   : > { %v1114_v19 = vpop.permute.xlu0 %1113 }
 0x322   : > { %1003 = vrot.lane.b32.xlu1 %v926_v53, %s2305_s16 }
 0x329   : > { %1115 = vrot.lane.b32.xlu2 %v1746_v47, %s2306_s12 }
 0x32a   : > { %1204 = vrot.lane.b32.xlu1 %v926_v53, %s2307_s30 }
 0x331   : > { %1206 = vrot.lane.b32.xlu2 %v1746_v47, %s2307_s30 }
 0x37c   : > { %v968_v10 = vpop.xlane.xlu1 %967 }
 0x37d   : > { %1914 = vrcp.f32 %v968_v10 }
 0x383   : > { %v1915_v12 = vpop.eup %1914 }
 0x384   : > { %v971_v11 = vpop.xlane.xlu2 %970  ;;  %v974_v15 = vmul.f32 %v1915_v12, %v1911_v63 }
 0x385   : > { %1916 = vrcp.f32 %v971_v11 }
 0x38b   : > { %v1917_v13 = vpop.eup %1916 }
 0x38c   : > { %v975_v16 = vmul.f32 %v1917_v13, %v1913_v3  ;;  %v1116_v17 = vpop.permute.xlu2 %1115 }
 0x38d   : > { %v1121_v18 = vsel %vm932_vm15, %v1116_v17, 0 }
 0x38e   : > { %1130 = vmatpush.bf16.xpose.msra.mxu1 %v1121_v18  ;;  %v976_v21 = vpack.c.bf16 %v975_v16, %v974_v15 }
 0x390   : > { %1704 = vmatmul.msk.bf16.vlgmr.msrb.gmra.mxu0 %vm953_vm1, %v976_v21 }
 0x394   : > { %v1004_v22 = vpop.permute.xlu1 %1003  ;;  %v1207_v23 = vpop.permute.xlu2 %1206 }
 0x395   : > { %v1212_v24 = vsel %vm932_vm15, %v1207_v23, 0  ;;  %1705 = vmatmul.msk.bf16.vlgmr.msrb.gmra.mxu1 %vm932_vm15, %v1004_v22 }
 0x396   : > { %1221 = vmatpush.bf16.xpose.msrb.mxu0 %v1212_v24 }
 0x39c   : > { %v1205_v35 = vpop.permute.xlu1 %1204 }
 0x3a5   : > { %1709 = vmatmul.msk.bf16.vlgmr.msra.gmra.mxu1 %vm932_vm15, %v1114_v19 }
 0x40d   : > { %v995_v25 = vpop.f32.mrf.mxu0 }
 0x412   : > { %v1022_v26 = vpop.f32.mrf.mxu1 }
 0x413   : > { %v1027_v27 = vsel %vm953_vm1, %v1022_v26, -inf }
 0x414   : > { %1028 = vmax.xlane.f32.xlu0 %v1027_v27  ;;  %v1071_v27 = vld [vmem:[#allocation13 + $0x4] sm:$0xf] }
 0x415   : > { %v997_v20 = vpop.f32.mrf.mxu0 }
 0x416   : > { %v1000_v28 = vpack.c.bf16 %v997_v20, %v995_v25 }
 0x418   : > { %1708 = vmatmul.msk.bf16.vlgmr.msra.gmra.mxu0 %vm932_vm15, %v1000_v28  ;;  %v1077_v28 = vsel %vm1075_vm2, %v1071_v27, 0 }
 0x419   : > { %1086 = vmatpush.bf16.msrb.mxu3 %v1077_v28 }
 0x41a   : > { %v1024_v31 = vpop.f32.mrf.mxu1 }
 0x41b   : > { %v1030_v32 = vsel %vm953_vm1, %v1024_v31, -inf }
 0x41c   : > { %1031 = vmax.xlane.f32.xlu2 %v1030_v32 }
 0x422   : > { %v1132_v33 = vpop.f32.mrf.mxu1 }
 0x423   : > { %v1137_v34 = vsel %vm953_vm1, %v1132_v33, -inf }
 0x424   : > { %1138 = vmax.xlane.f32.xlu1 %v1137_v34 }
 0x428   : > { %1712 = vmatmul.msk.bf16.vlgmr.msrb.gmra.mxu0 %vm932_vm15, %v1205_v35 }
 0x42a   : > { %v1134_v36 = vpop.f32.mrf.mxu1 }
 0x42b   : > { %v1140_v37 = vsel %vm953_vm1, %v1134_v36, -inf }
 0x42c   : > { %1141 = vmax.xlane.f32.xlu0 %v1140_v37 }
 0x487   : > { %v1029_v29 = vpop.xlane.xlu0 %1028 }
 0x488   : > { %v1033_v38 = vsub.f32 %v1022_v26, %v1029_v29 }
 0x48a   : > { %v1035_v30 = vmul.f32 1.442695, %v1033_v38 }
 0x48c   : > { %1918 = vpow2.f32 %v1035_v30 }
 0x48f   : > { %v1032_v44 = vpop.xlane.xlu2 %1031 }
 0x490   : > { %v1034_v46 = vsub.f32 %v1024_v31, %v1032_v44 }
 0x492   : > { %v1919_v39 = vpop.eup %1918  ;;  %v1037_v48 = vmul.f32 1.442695, %v1034_v46 }
 0x493   : > { %v1039_v40 = vsel %vm953_vm1, %v1919_v39, 0.0 }
 0x494   : > { %1040 = vadd.xlane.f32.xlu0 %v1039_v40  ;;  %v1272_v40 = vld [vmem:[#allocation13 + $0xc] sm:$0xf] }
 0x495   : > { %v2659_v41 = vpop.f32.mrf.mxu0 }
 0x497   : > { %v1139_v42 = vpop.xlane.xlu1 %1138 }
 0x498   : > { %v1143_v43 = vsub.f32 %v1132_v33, %v1139_v42  ;;  %v1277_v42 = vsel %vm1075_vm2, %v1272_v40, 0 }
 0x49a   : > { %v1145_v45 = vmul.f32 1.442695, %v1143_v43  ;;  %v1181_v43 = vld [vmem:[#allocation13 + $0x8] sm:$0xf] }
 0x49b   : > { %v1186_v44 = vsel %vm1075_vm2, %v1181_v43, 0 }
 0x49c   : > { %1920 = vpow2.f32 %v1145_v45  ;;  %1195 = vmatpush.bf16.msra.mxu3 %v1186_v44 }
 0x49d   : > { %v2661_v47 = vpop.f32.mrf.mxu0  ;;  %1922 = vpow2.f32 %v1037_v48 }
 0x49f   : > { %v1142_v51 = vpop.xlane.xlu0 %1141 }
 0x4a0   : > { %v1144_v53 = vsub.f32 %v1134_v36, %v1142_v51 }
 0x4a2   : > { %v2663_v50 = vpop.eup %1920  ;;  %v1147_v56 = vmul.f32 1.442695, %v1144_v53 }
 0x4a3   : > { %v1149_v52 = vsel %vm953_vm1, %v2663_v50, 0.0  ;;  %v1923_v57 = vpop.eup %1922 }
 0x4a4   : > { %1150 = vadd.xlane.f32.xlu0 %v1149_v52  ;;  %1924 = vpow2.f32 %v1147_v56  ;;  %v1042_v59 = vsel %vm953_vm1, %v1923_v57, 0.0 }
 0x4a5   : > { %v1223_v54 = vpop.f32.mrf.mxu0 }
 0x4a6   : > { %v1228_v55 = vsel %vm953_vm1, %v1223_v54, -inf }
 0x4a7   : > { %1229 = vmax.xlane.f32.xlu2 %v1228_v55 }
 0x4aa   : > { %v1925_v61 = vpop.eup %1924 }
 0x4ab   : > { %v1152_v62 = vsel %vm953_vm1, %v1925_v61, 0.0 }
 0x4ad   : > { %v1225_v58 = vpop.f32.mrf.mxu0 }
 0x4ae   : > { %v1231_v60 = vsel %vm953_vm1, %v1225_v58, -inf }
 0x4af   : > { %1043 = vadd.xlane.f32.xlu2 %v1042_v59  ;;  %1232 = vmax.xlane.f32.xlu1 %v1231_v60  ;;  %v1895_v60 = vld [vmem:[%s2777_s8] ss:$0 sm:$0xff] }
 0x4b7   : > { %1153 = vadd.xlane.f32.xlu2 %v1152_v62 }
 0x4c8   : > { %1050 = vrot.lane.b32.xlu1 %v2630_v49, %s2305_s16 }
 0x507   : > { %v1041_v11 = vpop.xlane.xlu0 %1040 }
 0x517   : > { %v1151_v22 = vpop.xlane.xlu0 %1150 }
 0x51a   : > { %v1230_v63 = vpop.xlane.xlu2 %1229 }
 0x51b   : > { %v1234_v1 = vsub.f32 %v1223_v54, %v1230_v63 }
 0x51d   : > { %v1236_v2 = vmul.f32 1.442695, %v1234_v1 }
 0x51f   : > { %1926 = vpow2.f32 %v1236_v2 }
 0x522   : > { %v1233_v3 = vpop.xlane.xlu1 %1232  ;;  %v1044_v9 = vpop.xlane.xlu2 %1043 }
 0x523   : > { %v1235_v5 = vsub.f32 %v1225_v58, %v1233_v3 }
 0x525   : > { %v1927_v6 = vpop.eup %1926  ;;  %v1238_v7 = vmul.f32 1.442695, %v1235_v5 }
 0x526   : > { %v1240_v8 = vsel %vm953_vm1, %v1927_v6, 0.0 }
 0x527   : > { %1928 = vpow2.f32 %v1238_v7  ;;  %1241 = vadd.xlane.f32.xlu0 %v1240_v8 }
 0x528   : > { %1930 = vrcp.f32 %v1044_v9 }
 0x529   : > { %1932 = vrcp.f32 %v1041_v11 }
 0x52a   : > { %v1154_v23 = vpop.xlane.xlu2 %1153 }
 0x52d   : > { %v1929_v10 = vpop.eup %1928 }
 0x52e   : > { %v1243_v12 = vsel %vm953_vm1, %v1929_v10, 0.0  ;;  %v1931_v13 = vpop.eup %1930 }
 0x52f   : > { %1244 = vadd.xlane.f32.xlu2 %v1243_v12  ;;  %v1933_v15 = vpop.eup %1932  ;;  %v1048_v16 = vmul.f32 %v1931_v13, %v1923_v57 }
 0x530   : > { %v1047_v17 = vmul.f32 %v1933_v15, %v1919_v39 }
 0x532   : > { %v1049_v21 = vpack.c.bf16 %v1048_v16, %v1047_v17  ;;  %v1749_v17 = vld [vmem:[#allocation15 + $0x8] sm:$0xff] }
 0x53a   : > { %v1051_v18 = vpop.permute.xlu1 %1050 }
 0x53b   : > { %1063 = vmatpush.bf16.msrb.mxu2 %v1051_v18  ;;  %1160 = vrot.lane.b32.xlu0 %v2630_v49, %s2306_s12 }
 0x53e   : > { %1706 = vmatmul.msk.bf16.vlgmr.msrb.gmra.mxu2 %vm953_vm1, %v1049_v21 }
 0x547   : > { %1251 = vrot.lane.b32.xlu2 %v2630_v49, %s2307_s30  ;;  %s2822_s30 = sld [smem:[#allocation41_spill]] }
 0x54d   : > { %s1471_s25 = scalar_lea.hbm %s2822_s30, %s1752_s17  ;;  %s2210_s24 = scalar_lea.hbm %s2822_s30, 32 }
 0x54e   : > { %s1474_s7 = sshll.u32 %s1471_s25, 4  ;;  %s1475_s7 = int_to_ptr.hbm [resolvable:$true] %s1474_s7 }
 0x54f   : > { %s2204_s13 = sshra.s32 %s1475_s7, 4  ;;  %s2205_s13 = int_to_ptr.hbm [resolvable:$true] %s2204_s13 }
 0x550   : > { %s2206_s20 = scalar_lea.hbm %s2205_s13, 16  ;;  %p2211_p10 = scmp.lt.s32.totalorder %s2205_s13, %s2822_s30 }
 0x551   : > { %p2207_p1 = scmp.ne.s32.totalorder %s2205_s13, %s2206_s20  ;;  %p2212_p11 = scmp.lt.s32.totalorder %s2210_s24, %s2206_s20 }
 0x553   : > { %p2208_p3 = pnand %p2207_p1, %p2510_p2  ;;  %p2213_p12 = por %p2212_p11, %p2211_p10 }
 0x555   : > { %p2209_p9 = pneg %p2208_p3 }
 0x557   : > { %p2214_p13 = pnand %p2213_p12, %p2209_p9 }
 0x59a   : > { %v1242_v24 = vpop.xlane.xlu0 %1241 }
 0x59b   : > { %1934 = vrcp.f32 %v1242_v24 }
 0x59c   : > { %1936 = vrcp.f32 %v1154_v23  ;;  %v1748_v23 = vld [vmem:[#allocation15] sm:$0xff] }
 0x5a1   : > { %v1935_v25 = vpop.eup %1934 }
 0x5a2   : > { %v1245_v19 = vpop.xlane.xlu2 %1244  ;;  %v1937_v26 = vpop.eup %1936  ;;  %v1248_v32 = vmul.f32 %v1935_v25, %v1927_v6 }
 0x5a3   : > { %1938 = vrcp.f32 %v1245_v19  ;;  %v1158_v49 = vmul.f32 %v1937_v26, %v1925_v61 }
 0x5a4   : > { %1940 = vrcp.f32 %v1151_v22 }
 0x5a9   : > { %v1939_v20 = vpop.eup %1938 }
 0x5aa   : > { %v1941_v31 = vpop.eup %1940  ;;  %v1249_v33 = vmul.f32 %v1939_v20, %v1929_v10  ;;  %v1252_v34 = vpop.permute.xlu2 %1251 }
 0x5ab   : > { %1264 = vmatpush.bf16.msrb.mxu1 %v1252_v34  ;;  %v1157_v36 = vmul.f32 %v1941_v31, %v2663_v50 }
 0x5ac   : > { %v1250_v35 = vpack.c.bf16 %v1249_v33, %v1248_v32 }
 0x5ad   : > { %v1161_v37 = vpop.permute.xlu0 %1160  ;;  %v1159_v29 = vpack.c.bf16 %v1158_v49, %v1157_v36 }
 0x5ae   : > { %1173 = vmatpush.bf16.msra.mxu2 %v1161_v37  ;;  %1713 = vmatmul.msk.bf16.vlgmr.msrb.gmra.mxu1 %vm953_vm1, %v1250_v35 }
 0x5b1   : > { %1710 = vmatmul.msk.bf16.vlgmr.msra.gmra.mxu2 %vm953_vm1, %v1159_v29 }
 0x5b2   : > { %1286 = vmatpush.bf16.msrb.mxu2 %v1277_v42 }
 0x5c1   : > { %v1065_v38 = vpop.f32.mrf.mxu2 }
 0x5c9   : > { %v1067_v30 = vpop.f32.mrf.mxu2 }
 0x5ca   : > { %v1070_v39 = vpack.c.bf16 %v1067_v30, %v1065_v38 }
 0x5cc   : > { %1707 = vmatmul.msk.bf16.vlgmr.msrb.gmra.mxu3 %vm932_vm15, %v1070_v39  ;;  %v1897_v39 = vld [vmem:[%s2818_s22] ss:$0 sm:$0xff] }
 0x5cd   : > { %1389 = vmatpush.bf16.msrb.mxu3 %v1749_v17 }
 0x5d1   : > { %1390 = vmatpush.bf16.msrb.mxu3 %v1748_v23 }
 0x62b   : > { %v1266_v45 = vpop.f32.mrf.mxu1 }
 0x633   : > { %v1268_v46 = vpop.f32.mrf.mxu1 }
 0x634   : > { %v1271_v48 = vpack.c.bf16 %v1268_v46, %v1266_v45  ;;  %v1175_v50 = vpop.f32.mrf.mxu2 }
 0x636   : > { %1714 = vmatmul.msk.bf16.vlgmr.msrb.gmra.mxu2 %vm932_vm15, %v1271_v48  ;;  %v1751_v48 = vld [vmem:[#allocation16 + $0x8] sm:$0xff] }
 0x637   : > { %1445 = vmatpush.bf16.msra.mxu0 %v1751_v48 }
 0x63c   : > { %v1177_v51 = vpop.f32.mrf.mxu2 }
 0x63d   : > { %v1180_v52 = vpack.c.bf16 %v1177_v51, %v1175_v50  ;;  %v1750_v50 = vld [vmem:[#allocation16] sm:$0xff] }
 0x63e   : > { %v1898_v51 = vld [vmem:[%s2819_s21] ss:$0 sm:$0xff]  ;;  %1446 = vmatpush.bf16.msra.mxu0 %v1750_v50 }
 0x63f   : > { %1711 = vmatmul.msk.bf16.vlgmr.msra.gmra.mxu3 %vm932_vm15, %v1180_v52 }
 0x64f   : > { %v1088_v53 = vpop.f32.mrf.mxu3 }
 0x650   : > { %v1109_v55 = vadd.f32 %v2659_v41, %v1088_v53 }
 0x657   : > { %v1090_v54 = vpop.f32.mrf.mxu3 }
 0x658   : > { %v1111_v62 = vadd.f32 %v2661_v47, %v1090_v54 }
 0x6b9   : > { %v1288_v56 = vpop.f32.mrf.mxu2 }
 0x6c1   : > { %v1290_v41 = vpop.f32.mrf.mxu2 }
 0x6c2   : > { %v1197_v57 = vpop.f32.mrf.mxu3 }
 0x6c3   : > { %v1202_v58 = vadd.f32 %v1197_v57, %v1109_v55 }
 0x6c5   : > { %v1293_v59 = vadd.f32 %v1288_v56, %v1202_v58 }
 0x6c7   : > { %v1295_v61 = vadd.f32 %v1293_v59, %v2569_v0 }
 0x6c9   : > { %v2695_v63 = vadd.f32 %v1895_v60, %v1295_v61 }
 0x6ca   : > { %v1199_v1 = vpop.f32.mrf.mxu3 }
 0x6cb   : > { %v1203_v2 = vadd.f32 %v1199_v1, %v1111_v62  ;;  %v1305_v3 = vsel %vm685_vm0, %v2695_v63, 0.0 }
 0x6cc   : > { %1306 = vadd.xlane.f32.xlu1 %v1305_v3 }
 0x6cd   : > { %v1294_v5 = vadd.f32 %v1290_v41, %v1203_v2 }
 0x6cf   : > { %v1296_v6 = vadd.f32 %v1294_v5, %v2574_v4 }
 0x6d1   : > { %v2700_v7 = vadd.f32 %v1895_v60, %v1296_v6 }
 0x6d3   : > { %v1308_v8 = vsel %vm685_vm0, %v2700_v7, 0.0 }
 0x6d4   : > { %1309 = vadd.xlane.f32.xlu0 %v1308_v8 }
 0x73f   : > { %v1307_v0 = vpop.xlane.xlu1 %1306 }
 0x740   : > { %v1311_v47 = vmul.f32 %v1307_v0, %v2579_v14 }
 0x742   : > { %v1313_v9 = vsub.f32 %v2695_v63, %v1311_v47 }
 0x744   : > { %v1315_v10 = vmul.f32 %v1313_v9, %v1313_v9 }
 0x746   : > { %v1317_v11 = vsel %vm685_vm0, %v1315_v10, 0.0 }
 0x747   : > { %1318 = vadd.xlane.f32.xlu2 %v1317_v11  ;;  %v1310_v12 = vpop.xlane.xlu0 %1309 }
 0x748   : > { %v1312_v13 = vmul.f32 %v1310_v12, %v2579_v14  ;;  %v1899_v12 = vld [vmem:[%s2821_s29] ss:$0 sm:$0xff] }
 0x74a   : > { %v1314_v4 = vsub.f32 %v2700_v7, %v1312_v13 }
 0x74c   : > { %v1316_v15 = vmul.f32 %v1314_v4, %v1314_v4 }
 0x74e   : > { %v1320_v16 = vsel %vm685_vm0, %v1316_v15, 0.0 }
 0x74f   : > { %1321 = vadd.xlane.f32.xlu1 %v1320_v16 }
 0x7ba   : > { %v1319_v18 = vpop.xlane.xlu2 %1318 }
 0x7bb   : > { %v1323_v21 = vmul.f32 %v1319_v18, %v2579_v14 }
 0x7bd   : > { %v1325_v22 = vadd.f32 1e-06, %v1323_v21 }
 0x7bf   : > { %1942 = vrsqrt.f32 %v1325_v22  ;;  %vm1333_vm4 = vweird.f32 %v1325_v22 }
 0x7c2   : > { %v1322_v24 = vpop.xlane.xlu1 %1321 }
 0x7c3   : > { %v1324_v19 = vmul.f32 %v1322_v24, %v2579_v14  ;;  %v1896_v14 = vld [vmem:[%s2817_s11] ss:$0 sm:$0xff]  ;;  %s1458_s11 = scalar_lea.sflag [#allocation6], %s2536_s6 }
 0x7c5   : > { %v1943_v25 = vpop.eup %1942  ;;  %v1326_v26 = vadd.f32 1e-06, %v1324_v19 }
 0x7c6   : > { %v1328_v27 = vmul.f32 %v1943_v25, %v1325_v22  ;;  %vm1334_vm3 = vweird.f32 %v1943_v25 }
 0x7c7   : > { %1944 = vrsqrt.f32 %v1326_v26  ;;  %vm1335_vm5 = vmor %vm1333_vm4, %vm1334_vm3  ;;  %vm1343_vm7 = vweird.f32 %v1326_v26 }
 0x7c8   : > { %v1329_v20 = vmul.f32 %v1943_v25, %v1328_v27 }
 0x7ca   : > { %v1330_v28 = vmul.f32 0.5, %v1329_v20 }
 0x7cc   : > { %v1331_v31 = vsub.f32 1.5, %v1330_v28 }
 0x7cd   : > { %v1945_v32 = vpop.eup %1944 }
 0x7ce   : > { %v1332_v33 = vmul.f32 %v1943_v25, %v1331_v31  ;;  %v1338_v34 = vmul.f32 %v1945_v32, %v1326_v26  ;;  %vm1344_vm6 = vweird.f32 %v1945_v32 }
 0x7cf   : > { %vm1345_vm8 = vmor %vm1343_vm7, %vm1344_vm6 }
 0x7d0   : > { %v1339_v49 = vmul.f32 %v1945_v32, %v1338_v34  ;;  %v1336_v35 = vsel %vm1335_vm5, %v1943_v25, %v1332_v33 }
 0x7d1   : > { %v1347_v29 = vmul.f32 %v1336_v35, %v1313_v9 }
 0x7d2   : > { %v1340_v36 = vmul.f32 0.5, %v1339_v49 }
 0x7d3   : > { %v1352_v40 = vmul.f32 %v1896_v14, %v1347_v29 }
 0x7d4   : > { %v1341_v37 = vsub.f32 1.5, %v1340_v36 }
 0x7d5   : > { %v1357_v44 = vadd.f32 %v1897_v39, %v1352_v40 }
 0x7d6   : > { %v1342_v38 = vmul.f32 %v1945_v32, %v1341_v37 }
 0x7d8   : > { %v1346_v30 = vsel %vm1345_vm8, %v1945_v32, %v1342_v38 }
 0x7d9   : > { %v1348_v42 = vmul.f32 %v1346_v30, %v1314_v4 }
 0x7db   : > { %v1353_v43 = vmul.f32 %v1896_v14, %v1348_v42 }
 0x7dd   : > { %v1358_v45 = vadd.f32 %v1897_v39, %v1353_v43 }
 0x7df   : > { %v1359_v46 = vpack.c.bf16 %v1358_v45, %v1357_v44 }
 0x7e1   : > { %1723 = vmatmul.msk.bf16.vlgmr.msrb.gmra.mxu3 %vm685_vm0, %v1359_v46 }
 0x864   : > { %v1392_v52 = vpop.f32.mrf.mxu3 }
 0x865   : > { %v1393_v53 = vadd.f32 %v1898_v51, %v1392_v52 }
 0x867   : > { %v1399_v54 = vmul.f32 0.044715, %v1393_v53  ;;  %v1397_v8 = vmul.f32 0.5, %v1393_v53 }
 0x869   : > { %v1401_v55 = vmul.f32 %v1399_v54, %v1393_v53 }
 0x86b   : > { %v1403_v56 = vmul.f32 %v1401_v55, %v1393_v53 }
 0x86c   : > { %v1394_v57 = vpop.f32.mrf.mxu3 }
 0x86d   : > { %v1405_v58 = vadd.f32 %v1403_v56, %v1393_v53  ;;  %v1395_v59 = vadd.f32 %v1898_v51, %v1394_v57 }
 0x86f   : > { %v1400_v60 = vmul.f32 0.044715, %v1395_v59  ;;  %v1407_v61 = vmul.f32 0.7978846, %v1405_v58  ;;  %v1398_v0 = vmul.f32 0.5, %v1395_v59 }
 0x871   : > { %v1402_v62 = vmul.f32 %v1400_v60, %v1395_v59  ;;  %1946 = vtanh.f32 %v1407_v61 }
 0x873   : > { %v1404_v1 = vmul.f32 %v1402_v62, %v1395_v59 }
 0x875   : > { %v1406_v2 = vadd.f32 %v1404_v1, %v1395_v59 }
 0x877   : > { %v1408_v3 = vmul.f32 0.7978846, %v1406_v2  ;;  %v1947_v41 = vpop.eup %1946 }
 0x878   : > { %v1411_v5 = vadd.f32 1.0, %v1947_v41 }
 0x879   : > { %1948 = vtanh.f32 %v1408_v3 }
 0x87a   : > { %v1413_v9 = vmul.f32 %v1411_v5, %v1397_v8 }
 0x87f   : > { %v1949_v6 = vpop.eup %1948 }
 0x880   : > { %v1412_v47 = vadd.f32 1.0, %v1949_v6 }
 0x882   : > { %v1414_v10 = vmul.f32 %v1412_v47, %v1398_v0 }
 0x884   : > { %v1415_v11 = vpack.c.bf16 %v1414_v10, %v1413_v9 }
 0x886   : > { %1732 = vmatmul.msk.bf16.vlgmr.msra.gmra.mxu0 %vm685_vm0, %v1415_v11 }
 0x903   : > { %v1448_v13 = vpop.f32.mrf.mxu0 }
 0x904   : > { %v1449_v4 = vadd.f32 %v1899_v12, %v1448_v13 }
 0x906   : > { %v1453_v15 = vadd.f32 %v1449_v4, %v2695_v63 }
 0x908   : > { %1455 = vst.msk [vmem:[%s673_s27] sm:$0xff] %vm685_vm0, %v1453_v15 }
 0x90b   : > { %v1450_v16 = vpop.f32.mrf.mxu0 }
 0x90c   : > { %v1451_v17 = vadd.f32 %v1899_v12, %v1450_v16 }
 0x90e   : > { %v1454_v18 = vadd.f32 %v1451_v17, %v2700_v7 }
 0x910   : > { %1456 = vst.msk [vmem:[%s673_s27 + $0x8] sm:$0xff] %vm685_vm0, %v1454_v18 }
 0x911   : > { %2217 = shalt.err (!%p2214_p13)
}
 0x912   : > { %s2308_s6 = smov 128   ;;  %s2309_s4 = smov 8  }
 0x913   : > { %1781 = dma.vmem_to_hbm [thread:$0]  (%p2510_p2), %s1473_s5, 256, %s1475_s7, %s1458_s11, %s2308_s6, %s2308_s6, %s2309_s4  }
 0x914 PF: > { %s1489_s26 = sand.u32 1, %s2272_s18   ;;  %p1810_p0 = pnand %p1651_p6, %p2517_p5 }
 0x915   : > { %s1490_s10 = scalar_lea.sflag [#allocation6], %s1489_s26 }
 0x916   : > { %p1811_p4 = pneg %p1810_p0 }
 0x918   : > { %2267 = dma.done.wait (%p1811_p4), %s1490_s10, 256  }
 0x919   : > { %2269 = vsyncadd (%p1811_p4), %s1490_s10, 4294967040  ;;  %s37_s23 = sadd.s32 1, %s2292_s23   ;;  %s2823_s29 = sld [smem:[#allocation26_spill]] }
 0x91a   : > { %p34_p7 = scmp.ge.s32.totalorder %s37_s23, 4   ;;  %s2824_s20 = sld [smem:[#allocation30_spill]] }
 0x91b   : > { %s2825_s21 = sld [smem:[#allocation28_spill]]  ;;  %s2827_s18 = smov %s2276_s19 }
 0x91c   : > { %s2826_s22 = sld [smem:[#allocation29_spill]]  ;;  %36 = sbr.rel (!%p34_p7) target bundleno = 23 (0x17), region = 166 }
 0x91f   : > { %s2828_s19 = smov %s2823_s29 }
 0x921   :  { %1496 = vsyncpa [#allocation5], 1 }
 0x922   :  { %1498 = vsyncpa [#allocation5 + $0x1], 1 }
 0x923   :  { %1499 = vsyncpa [#allocation8], 1 }
 0x924   :  { %1501 = vsyncpa [#allocation8 + $0x1], 1 }
 0x925   :  { %1502 = vsyncpa [#allocation11], 1 }
 0x926   :  { %1503 = vsyncpa [#allocation14], 1 }
 0x927   :  { %1504 = vsyncpa [#allocation17], 1 }
 0x928   :  { %1505 = vsyncpa [#allocation6], 1 }
 0x929   :  { %1507 = vsyncpa [#allocation6 + $0x1], 1 }

</bundles_post_ra>
